<compile_context>
chip_gen: v5e
topology: v5e:2x2
jax: 0.10.0
libtpu: 0.0.40
codegen_flags: <defaults>
</compile_context>

<pallas_src>
import functools

import numpy as np
import jax
import jax.numpy as jnp
from jax import lax
from jax.experimental import pallas as pl
from jax.experimental.pallas import tpu as pltpu

# Deterministic "config" standing in for cfg.gnn.*
DIM_INNER = 12          # cfg.gnn.dim_inner
LGVARIANT = 22          # cfg.gnn.lgvariant
HDIM = DIM_INNER // 3   # self.hdim


def _next_pow2(n):
    n = int(n)
    return 1 if n <= 1 else 1 << (n - 1).bit_length()


def _floor_pow2(n):
    n = int(n)
    return 1 if n < 1 else 1 << (n.bit_length() - 1)


def _scatter_mean_pair_kernel(steps_per_core, n_node_tiles, count_row,
                              step_ni_ref, step_ei_ref,
                              idx0_ref, idx1_ref, xT_ref,
                              out0_ref, out1_ref):
    """One grid step = one (node_tile, edge_tile) pair from the prefetched step list.

    grid = (num_cores, steps_per_core).  Each core row owns a disjoint,
    contiguous range of output node tiles; within a row the steps are sorted by
    node tile so every output block is visited over one contiguous run:
    zero-init on the first step of the run, accumulate the one-hot matmuls every
    real step, exact mean-divide on the last.
    """
    del step_ei_ref  # only used by the index_maps
    c = pl.program_id(0)
    s = pl.program_id(1)
    base = c * steps_per_core
    ni = step_ni_ref[base + s]
    prev_ni = step_ni_ref[base + jnp.maximum(s - 1, 0)]
    next_ni = step_ni_ref[base + jnp.minimum(s + 1, steps_per_core - 1)]
    is_first = jnp.logical_or(s == 0, ni != prev_ni)
    is_last = jnp.logical_or(s == steps_per_core - 1, ni != next_ni)

    @pl.when(is_first)
    def _():
        out0_ref[...] = jnp.zeros_like(out0_ref)
        out1_ref[...] = jnp.zeros_like(out1_ref)

    # Real steps only: dummy padding steps (ni >= n_node_tiles, pointing at a
    # per-core scratch tile) skip the compare + matmul entirely.
    @pl.when(ni < n_node_tiles)
    def _():
        tn = out0_ref.shape[1]
        node_ids = ni * tn + jax.lax.broadcasted_iota(jnp.int32, (tn, 1), 0)  # (tn, 1)
        xt = xT_ref[...]                                                       # (DPAD, te)
        dims = (((1,), (1,)), ((), ()))   # contract the lane (edge) dim of both

        # Padding edges carry index -1 and never match any node id.
        m0 = (idx0_ref[...] == node_ids).astype(xt.dtype)                      # (tn, te)
        out0_ref[...] += lax.dot_general(xt, m0, dims,
                                         preferred_element_type=jnp.float32)
        m1 = (idx1_ref[...] == node_ids).astype(xt.dtype)                      # (tn, te)
        out1_ref[...] += lax.dot_general(xt, m1, dims,
                                         preferred_element_type=jnp.float32)

    @pl.when(is_last)
    def _():
        # Row `count_row` holds the per-node edge counts (from the ones row in xT).
        cnt0 = jnp.maximum(out0_ref[count_row:count_row + 1, :], 1.0)          # (1, tn)
        cnt1 = jnp.maximum(out1_ref[count_row:count_row + 1, :], 1.0)
        out0_ref[...] = out0_ref[...] / cnt0
        out1_ref[...] = out1_ref[...] / cnt1


def scatter_mean_pair(x, idx0, idx1, n_out, *, tn=128, te=8192, num_cores=2):
    """scatter_mean(x, idx0) and scatter_mean(x, idx1), output rows = n_out."""
    idx0 = np.asarray(idx0, np.int64)
    idx1 = np.asarray(idx1, np.int64)
    E, D = x.shape
    if E == 0 or n_out <= 0:
        z = jnp.zeros((max(n_out, 0), D), jnp.float32)
        return z, z
    assert idx0.shape == (E,) and idx1.shape == (E,)
    assert max(int(idx0.max()), int(idx1.max())) < 2 ** 31, "indices overflow int32"

    num_cores = max(1, int(num_cores))

    # Bucketed (power-of-two) padded sizes so variable-size graph batches hit a
    # small number of distinct compiled shapes.  Node tiles live in lanes now,
    # so both tn_eff and te_eff must be multiples of 128.
    e_pad = max(128, _next_pow2(E))
    te_eff = max(128, min(_floor_pow2(te), e_pad))
    n_pad = max(128, _next_pow2(n_out))
    tn_eff = max(128, min(_floor_pow2(tn), n_pad))
    # Keep the per-step (tn, te) f32 one-hot mask temporaries bounded (VMEM).
    while tn_eff * te_eff * 4 > (8 << 20) and te_eff > 128:
        te_eff //= 2
    e_tiles = e_pad // te_eff
    n_tiles = n_pad // tn_eff

    DP = D + 1                        # +1 all-ones row -> counts from the same matmul
    DPAD = ((DP + 7) // 8) * 8        # pad feature rows to a sublane multiple
    count_row = D

    # x transposed so the node dimension ends up in lanes of the output blocks.
    xT = jnp.concatenate([
        jnp.asarray(x, jnp.float32).T,                 # (D, E)
        jnp.ones((1, E), jnp.float32),                 # count row
        jnp.zeros((DPAD - DP, E), jnp.float32),        # sublane pad rows
    ], axis=0)
    xT = jnp.pad(xT, ((0, 0), (0, e_pad - E)))         # (DPAD, e_pad)

    idx0_p = np.full(e_pad, -1, np.int32); idx0_p[:E] = idx0
    idx1_p = np.full(e_pad, -1, np.int32); idx1_p[:E] = idx1

    # ---- Host-side step list (vectorized): only (node_tile, edge_tile) pairs
    # whose index ranges overlap.  Batched graphs give near block-diagonal
    # structure, collapsing the dense O(n_tiles*e_tiles) sweep to ~O(E+N tiles).
    def _tile_ranges(ip):
        t = ip.reshape(e_tiles, te_eff)
        valid = t >= 0
        lo = np.where(valid, t, np.iinfo(np.int32).max).min(axis=1)
        hi = np.where(valid, t, -1).max(axis=1)
        return lo, hi, valid.any(axis=1)

    lo0, hi0, v0 = _tile_ranges(idx0_p)
    lo1, hi1, v1 = _tile_ranges(idx1_p)
    has = v0 | v1
    lo_t = np.minimum(lo0, lo1) // tn_eff
    hi_t = np.maximum(hi0, hi1) // tn_eff
    counts = np.where(has, hi_t - lo_t + 1, 0).astype(np.int64)
    total = int(counts.sum())
    step_ei = np.repeat(np.arange(e_tiles, dtype=np.int64), counts)
    starts = np.repeat(np.cumsum(counts) - counts, counts)
    step_ni = (np.arange(total, dtype=np.int64) - starts
               + np.repeat(np.where(has, lo_t, 0), counts))

    covered = np.zeros(n_tiles, bool)
    if total:
        covered[step_ni] = True
    missing = np.nonzero(~covered)[0]                   # node tiles with no edges -> zeros
    step_ni = np.concatenate([step_ni, missing.astype(np.int64)])
    step_ei = np.concatenate([step_ei, np.zeros(missing.size, np.int64)])
    order = np.argsort(step_ni, kind="stable")
    step_ni = step_ni[order]
    step_ei = step_ei[order]

    # ---- Split the node-tile-sorted step list into `num_cores` contiguous
    # chunks at node-tile boundaries (disjoint output ranges per core -> safe
    # for a "parallel" leading grid axis), balancing step counts.
    steps_per_tile = np.bincount(step_ni, minlength=n_tiles)
    cum = np.cumsum(steps_per_tile)
    total_steps = int(cum[-1])
    chunks = []
    prev_tile = 0
    for c in range(num_cores):
        if c == num_cores - 1:
            end_tile = n_tiles
        else:
            target = (c + 1) * total_steps / num_cores
            end_tile = int(np.searchsorted(cum, target, side="left")) + 1
            end_tile = min(max(end_tile, prev_tile), n_tiles)
        sel = (step_ni >= prev_tile) & (step_ni < end_tile)
        chunks.append((step_ni[sel], step_ei[sel]))
        prev_tile = end_tile

    # Power-of-two bucketed per-core step count (few distinct compiled shapes);
    # dummy steps point at a per-core scratch node tile and are predicated out.
    steps_per_core = max(1, _next_pow2(max(len(cn) for cn, _ in chunks)))
    ni_flat = np.empty(num_cores * steps_per_core, np.int32)
    ei_flat = np.zeros(num_cores * steps_per_core, np.int32)
    for c, (cn, ce) in enumerate(chunks):
        base = c * steps_per_core
        ni_flat[base:base + len(cn)] = cn
        ei_flat[base:base + len(ce)] = ce
        ni_flat[base + len(cn):base + steps_per_core] = n_tiles + c   # per-core scratch tile

    out_cols = (n_tiles + num_cores) * tn_eff        # + num_cores scratch tiles
    out_sds = jax.ShapeDtypeStruct((DPAD, out_cols), jnp.float32)

    # VMEM limit derived from the actual tiles: double-buffered pipeline blocks
    # plus headroom for the (tn, te) mask temporaries; capped for v7x (64 MiB).
    mask_bytes = tn_eff * te_eff * 4
    pipe_bytes = 2 * (DPAD * te_eff * 4 + 2 * 8 * te_eff * 4 + 2 * DPAD * tn_eff * 4)
    vmem_limit = int(np.clip(pipe_bytes + 6 * mask_bytes + (8 << 20),
                             16 << 20, 40 << 20))

    kernel = functools.partial(_scatter_mean_pair_kernel,
                               steps_per_core, n_tiles, count_row)

    out0, out1 = pl.pallas_call(
        kernel,
        out_shape=(out_sds, out_sds),
        grid_spec=pltpu.PrefetchScalarGridSpec(
            num_scalar_prefetch=2,
            grid=(num_cores, steps_per_core),
            in_specs=[
                pl.BlockSpec((1, te_eff),
                             lambda c, s, ni, ei: (0, ei[c * steps_per_core + s])),   # idx0
                pl.BlockSpec((1, te_eff),
                             lambda c, s, ni, ei: (0, ei[c * steps_per_core + s])),   # idx1
                pl.BlockSpec((DPAD, te_eff),
                             lambda c, s, ni, ei: (0, ei[c * steps_per_core + s])),   # xT (+ones row)
            ],
            out_specs=[
                pl.BlockSpec((DPAD, tn_eff),
                             lambda c, s, ni, ei: (0, ni[c * steps_per_core + s])),   # outgoing mean^T
                pl.BlockSpec((DPAD, tn_eff),
                             lambda c, s, ni, ei: (0, ni[c * steps_per_core + s])),   # incoming mean^T
            ],
        ),
        compiler_params=pltpu.CompilerParams(
            dimension_semantics=("parallel", "arbitrary"),
            vmem_limit_bytes=vmem_limit),
    )(jnp.asarray(ni_flat), jnp.asarray(ei_flat),
      jnp.asarray(idx0_p).reshape(1, e_pad),
      jnp.asarray(idx1_p).reshape(1, e_pad),
      xT)

    # Strip the count row / padding rows / scratch tiles and transpose back.
    return out0[:D, :n_out].T, out1[:D, :n_out].T


def lg2graph_node_forward(x, lg_node_idx, ptr, org_graph_size, *,
                          tn=128, te=8192, num_cores=2):
    """Full forward pass of lg2graphNode (index glue in numpy, scatter in Pallas)."""
    org_graph_size = np.asarray(org_graph_size, dtype=np.int64)
    ptr = np.asarray(ptr, dtype=np.int64)
    lg_node_idx = np.asarray(lg_node_idx, dtype=np.int64)

    E = lg_node_idx.shape[0]
    if E == 0:
        # Degenerate batch: no line-graph nodes -> empty output.
        return jnp.zeros((0, DIM_INNER), jnp.float32)

    mask = np.cumsum(np.concatenate([np.zeros(1, np.int64), org_graph_size]))[:-1]
    padding = np.repeat(mask, ptr[1:] - ptr[:-1])                 # [E]
    padded_idx = lg_node_idx + padding[:, None]                   # [E, 2]

    idx_out = padded_idx[:, 0]
    idx_in = padded_idx[:, 1]
    # torch_scatter output sizes are max(idx)+1; zeroPadding extends to the larger one.
    n_out = int(max(idx_out.max(), idx_in.max())) + 1

    outgoing, incoming = scatter_mean_pair(x, idx_out, idx_in, n_out,
                                           tn=tn, te=te, num_cores=num_cores)

    h = HDIM
    if LGVARIANT == 21:
        new_x = jnp.concatenate([incoming[:, :2 * h], outgoing[:, 2 * h:]], axis=1)
    elif LGVARIANT == 22:
        new_x = jnp.concatenate([(incoming[:, :h] - outgoing[:, :h]) / 2,
                                 incoming[:, h:2 * h],
                                 outgoing[:, 2 * h:]], axis=1)
    else:
        new_x = incoming - outgoing
    return new_x


def _reference_forward(x, lg_node_idx, ptr, org_graph_size):
    """Pure numpy reference of the same math, for verification."""
    x = np.asarray(x, np.float32)
    org_graph_size = np.asarray(org_graph_size, np.int64)
    ptr = np.asarray(ptr, np.int64)
    lg_node_idx = np.asarray(lg_node_idx, np.int64)

    mask = np.cumsum(np.concatenate([np.zeros(1, np.int64), org_graph_size]))[:-1]
    padding = np.repeat(mask, ptr[1:] - ptr[:-1])
    idx = lg_node_idx + padding[:, None]

    def scatter_mean(vals, index):
        n = int(index.max()) + 1
        s = np.zeros((n, vals.shape[1]), np.float32)
        c = np.zeros((n, 1), np.float32)
        np.add.at(s, index, vals)
        np.add.at(c, index, 1.0)
        return s / np.maximum(c, 1.0)

    out = scatter_mean(x, idx[:, 0])
    inc = scatter_mean(x, idx[:, 1])
    n = max(out.shape[0], inc.shape[0])
    out = np.pad(out, ((0, n - out.shape[0]), (0, 0)))
    inc = np.pad(inc, ((0, n - inc.shape[0]), (0, 0)))
    h = HDIM
    if LGVARIANT == 21:
        return np.concatenate([inc[:, :2 * h], out[:, 2 * h:]], axis=1)
    if LGVARIANT == 22:
        return np.concatenate([(inc[:, :h] - out[:, :h]) / 2,
                               inc[:, h:2 * h], out[:, 2 * h:]], axis=1)
    return inc - out


if __name__ == "__main__":
    key = jax.random.PRNGKey(0)

    # Deterministic batch of 4 small graphs; line-graph nodes == directed edges of
    # the original graphs, lg_node_idx holds (src, dst) in *local* node ids.
    rng = np.random.default_rng(0)
    graph_sizes = np.array([37, 23, 51, 18], np.int64)          # nodes per graph
    edge_lists = []
    for n_g in graph_sizes:
        m_g = int(3 * n_g)
        src = rng.integers(0, n_g, m_g)
        dst = rng.integers(0, n_g, m_g)
        edge_lists.append(np.stack([src, dst], axis=1))
    lg_node_idx = np.concatenate(edge_lists, axis=0).astype(np.int64)       # [E, 2]
    edge_counts = np.array([e.shape[0] for e in edge_lists], np.int64)
    ptr = np.concatenate([np.zeros(1, np.int64), np.cumsum(edge_counts)])   # lg-node ptr
    org_graph_size = graph_sizes

    E = lg_node_idx.shape[0]
    x = jax.random.normal(key, (E, DIM_INNER), dtype=jnp.float32)           # batch.x

    ref = _reference_forward(np.asarray(x), lg_node_idx, ptr, org_graph_size)
    # f32 features, 0/1 masks and an exact divide: parity with the f32 torch
    # reference is limited only by MXU accumulation order / pass precision.
    RTOL = ATOL = 5e-3

    # 1) Default (large, clamped) tiles, 2-row "parallel" grid.
    new_x = lg2graph_node_forward(x, lg_node_idx, ptr, org_graph_size)
    new_x = jax.block_until_ready(new_x)
    np.testing.assert_allclose(np.asarray(new_x), ref, rtol=RTOL, atol=ATOL)

    # 2) Small edge tiles: multi-step accumulation runs per node tile, several
    #    edge tiles per core, dummy-step predication.
    new_x2 = lg2graph_node_forward(x, lg_node_idx, ptr, org_graph_size, te=128)
    new_x2 = jax.block_until_ready(new_x2)
    np.testing.assert_allclose(np.asarray(new_x2), ref, rtol=RTOL, atol=ATOL)

    # 3) Single-core grid (num_cores=1) with small edge tiles.
    new_x3 = lg2graph_node_forward(x, lg_node_idx, ptr, org_graph_size,
                                   te=256, num_cores=1)
    new_x3 = jax.block_until_ready(new_x3)
    np.testing.assert_allclose(np.asarray(new_x3), ref, rtol=RTOL, atol=ATOL)

    print("KERNEL_OK")
</pallas_src>

<mosaic_0001>
module attributes {stable_mosaic.version = 11 : i64} {
  func.func @_scatter_mean_pair_kernel(%arg0: i32, %arg1: i32, %arg2: memref<2xi32, #tpu.memory_space<smem>>, %arg3: memref<2xi32, #tpu.memory_space<smem>>, %arg4: memref<1x512xi32, #tpu.memory_space<vmem>>, %arg5: memref<1x512xi32, #tpu.memory_space<vmem>>, %arg6: memref<16x512xf32, #tpu.memory_space<vmem>>, %arg7: memref<16x128xf32, #tpu.memory_space<vmem>>, %arg8: memref<16x128xf32, #tpu.memory_space<vmem>>) attributes {dimension_semantics = [#tpu.dimension_semantics<parallel>, #tpu.dimension_semantics<arbitrary>], iteration_bounds = array<i64: 2, 1>, scalar_prefetch = 2 : i64, scratch_operands = 0 : i64, tpu.core_type = #tpu.core_type<tc>, window_params = [{transform_indices = @transform_0, window_bounds = array<i64: 1, 512>}, {transform_indices = @transform_1, window_bounds = array<i64: 1, 512>}, {transform_indices = @transform_2, window_bounds = array<i64: 16, 512>}, {transform_indices = @transform_3, window_bounds = array<i64: 16, 128>}, {transform_indices = @transform_4, window_bounds = array<i64: 16, 128>}]} {
    %c1_i32 = arith.constant 1 : i32
    %0 = arith.muli %arg0, %c1_i32 : i32
    %1 = arith.addi %0, %arg1 : i32
    %2 = arith.index_cast %1 : i32 to index
    %3 = memref.load %arg2[%2] : memref<2xi32, #tpu.memory_space<smem>>
    %c1_i32_0 = arith.constant 1 : i32
    %4 = arith.subi %arg1, %c1_i32_0 : i32
    %c0_i32 = arith.constant 0 : i32
    %5 = arith.maxsi %4, %c0_i32 : i32
    %6 = arith.addi %0, %5 : i32
    %7 = arith.index_cast %6 : i32 to index
    %8 = memref.load %arg2[%7] : memref<2xi32, #tpu.memory_space<smem>>
    %c1_i32_1 = arith.constant 1 : i32
    %9 = arith.addi %arg1, %c1_i32_1 : i32
    %c0_i32_2 = arith.constant 0 : i32
    %10 = arith.minsi %9, %c0_i32_2 : i32
    %11 = arith.addi %0, %10 : i32
    %12 = arith.index_cast %11 : i32 to index
    %13 = memref.load %arg2[%12] : memref<2xi32, #tpu.memory_space<smem>>
    %c0_i32_3 = arith.constant 0 : i32
    %14 = arith.cmpi eq, %arg1, %c0_i32_3 : i32
    %15 = arith.cmpi ne, %3, %8 : i32
    %16 = arith.ori %14, %15 : i1
    %c0_i32_4 = arith.constant 0 : i32
    %17 = arith.cmpi eq, %arg1, %c0_i32_4 : i32
    %18 = arith.cmpi ne, %3, %13 : i32
    %19 = arith.ori %17, %18 : i1
    %20 = arith.extui %16 : i1 to i32
    %c0_i32_5 = arith.constant 0 : i32
    %21 = arith.cmpi ne, %20, %c0_i32_5 : i32
    scf.if %21 {
      %cst = arith.constant 0.000000e+00 : f32
      %27 = vector.broadcast %cst : f32 to vector<16x128xf32>
      %c0 = arith.constant 0 : index
      %c0_8 = arith.constant 0 : index
      %28 = vector.load %arg7[%c0, %c0_8] : memref<16x128xf32, #tpu.memory_space<vmem>>, vector<16x128xf32>
      tpu.vector_store %arg7[%c0, %c0_8], %27 {strides = array<i32>} : memref<16x128xf32, #tpu.memory_space<vmem>>, vector<16x128xf32>,
      %cst_9 = arith.constant 0.000000e+00 : f32
      %29 = vector.broadcast %cst_9 : f32 to vector<16x128xf32>
      %c0_10 = arith.constant 0 : index
      %c0_11 = arith.constant 0 : index
      %30 = vector.load %arg8[%c0_10, %c0_11] : memref<16x128xf32, #tpu.memory_space<vmem>>, vector<16x128xf32>
      tpu.vector_store %arg8[%c0_10, %c0_11], %29 {strides = array<i32>} : memref<16x128xf32, #tpu.memory_space<vmem>>, vector<16x128xf32>,
    } else {
    }
    %c2_i32 = arith.constant 2 : i32
    %22 = arith.cmpi slt, %3, %c2_i32 : i32
    %23 = arith.extui %22 : i1 to i32
    %c0_i32_6 = arith.constant 0 : i32
    %24 = arith.cmpi ne, %23, %c0_i32_6 : i32
    scf.if %24 {
      %c128_i32 = arith.constant 128 : i32
      %27 = arith.muli %3, %c128_i32 : i32
      %28 = tpu.iota {dimensions = array<i32: 0>} : vector<128x1xi32>
      %29 = vector.broadcast %27 : i32 to vector<128x1xi32>
      %30 = arith.addi %29, %28 : vector<128x1xi32>
      %c0 = arith.constant 0 : index
      %c0_8 = arith.constant 0 : index
      %31 = vector.load %arg6[%c0, %c0_8] : memref<16x512xf32, #tpu.memory_space<vmem>>, vector<16x512xf32>
      %c0_9 = arith.constant 0 : index
      %c0_10 = arith.constant 0 : index
      %32 = vector.load %arg4[%c0_9, %c0_10] : memref<1x512xi32, #tpu.memory_space<vmem>>, vector<1x512xi32>
      %33 = vector.broadcast %32 : vector<1x512xi32> to vector<128x512xi32>
      %34 = vector.broadcast %30 : vector<128x1xi32> to vector<128x512xi32>
      %35 = arith.cmpi eq, %33, %34 : vector<128x512xi32>
      %36 = arith.extui %35 : vector<128x512xi1> to vector<128x512xi32>
      %37 = arith.sitofp %36 : vector<128x512xi32> to vector<128x512xf32>
      %c0_11 = arith.constant 0 : index
      %c0_12 = arith.constant 0 : index
      %38 = vector.load %arg7[%c0_11, %c0_12] : memref<16x128xf32, #tpu.memory_space<vmem>>, vector<16x128xf32>
      %cst = arith.constant dense<0.000000e+00> : vector<16x128xf32>
      %39 = tpu.matmul %31, %37, %cst {dimension_numbers = #tpu.dot_dimension_numbers<[1], [1], [0], [0], [0, 0, 1, 0], [], []>} : vector<16x512xf32>, vector<128x512xf32>, vector<16x128xf32> -> vector<16x128xf32>
      %40 = arith.addf %38, %39 : vector<16x128xf32>
      %c0_13 = arith.constant 0 : index
      %c0_14 = arith.constant 0 : index
      %41 = vector.load %arg7[%c0_13, %c0_14] : memref<16x128xf32, #tpu.memory_space<vmem>>, vector<16x128xf32>
      tpu.vector_store %arg7[%c0_13, %c0_14], %40 {strides = array<i32>} : memref<16x128xf32, #tpu.memory_space<vmem>>, vector<16x128xf32>,
      %c0_15 = arith.constant 0 : index
      %c0_16 = arith.constant 0 : index
      %42 = vector.load %arg5[%c0_15, %c0_16] : memref<1x512xi32, #tpu.memory_space<vmem>>, vector<1x512xi32>
      %43 = vector.broadcast %42 : vector<1x512xi32> to vector<128x512xi32>
      %44 = vector.broadcast %30 : vector<128x1xi32> to vector<128x512xi32>
      %45 = arith.cmpi eq, %43, %44 : vector<128x512xi32>
      %46 = arith.extui %45 : vector<128x512xi1> to vector<128x512xi32>
      %47 = arith.sitofp %46 : vector<128x512xi32> to vector<128x512xf32>
      %c0_17 = arith.constant 0 : index
      %c0_18 = arith.constant 0 : index
      %48 = vector.load %arg8[%c0_17, %c0_18] : memref<16x128xf32, #tpu.memory_space<vmem>>, vector<16x128xf32>
      %cst_19 = arith.constant dense<0.000000e+00> : vector<16x128xf32>
      %49 = tpu.matmul %31, %47, %cst_19 {dimension_numbers = #tpu.dot_dimension_numbers<[1], [1], [0], [0], [0, 0, 1, 0], [], []>} : vector<16x512xf32>, vector<128x512xf32>, vector<16x128xf32> -> vector<16x128xf32>
      %50 = arith.addf %48, %49 : vector<16x128xf32>
      %c0_20 = arith.constant 0 : index
      %c0_21 = arith.constant 0 : index
      %51 = vector.load %arg8[%c0_20, %c0_21] : memref<16x128xf32, #tpu.memory_space<vmem>>, vector<16x128xf32>
      tpu.vector_store %arg8[%c0_20, %c0_21], %50 {strides = array<i32>} : memref<16x128xf32, #tpu.memory_space<vmem>>, vector<16x128xf32>,
    } else {
    }
    %25 = arith.extui %19 : i1 to i32
    %c0_i32_7 = arith.constant 0 : i32
    %26 = arith.cmpi ne, %25, %c0_i32_7 : i32
    scf.if %26 {
      %c12 = arith.constant 12 : index
      %c0 = arith.constant 0 : index
      %27 = vector.load %arg7[%c12, %c0] : memref<16x128xf32, #tpu.memory_space<vmem>>, vector<1x128xf32>
      %cst = arith.constant 1.000000e+00 : f32
      %28 = vector.broadcast %cst : f32 to vector<1x128xf32>
      %29 = arith.maximumf %27, %28 : vector<1x128xf32>
      %c12_8 = arith.constant 12 : index
      %c0_9 = arith.constant 0 : index
      %30 = vector.load %arg8[%c12_8, %c0_9] : memref<16x128xf32, #tpu.memory_space<vmem>>, vector<1x128xf32>
      %cst_10 = arith.constant 1.000000e+00 : f32
      %31 = vector.broadcast %cst_10 : f32 to vector<1x128xf32>
      %32 = arith.maximumf %30, %31 : vector<1x128xf32>
      %c0_11 = arith.constant 0 : index
      %c0_12 = arith.constant 0 : index
      %33 = vector.load %arg7[%c0_11, %c0_12] : memref<16x128xf32, #tpu.memory_space<vmem>>, vector<16x128xf32>
      %34 = vector.broadcast %29 : vector<1x128xf32> to vector<16x128xf32>
      %35 = arith.divf %33, %34 : vector<16x128xf32>
      %c0_13 = arith.constant 0 : index
      %c0_14 = arith.constant 0 : index
      %36 = vector.load %arg7[%c0_13, %c0_14] : memref<16x128xf32, #tpu.memory_space<vmem>>, vector<16x128xf32>
      tpu.vector_store %arg7[%c0_13, %c0_14], %35 {strides = array<i32>} : memref<16x128xf32, #tpu.memory_space<vmem>>, vector<16x128xf32>,
      %c0_15 = arith.constant 0 : index
      %c0_16 = arith.constant 0 : index
      %37 = vector.load %arg8[%c0_15, %c0_16] : memref<16x128xf32, #tpu.memory_space<vmem>>, vector<16x128xf32>
      %38 = vector.broadcast %32 : vector<1x128xf32> to vector<16x128xf32>
      %39 = arith.divf %37, %38 : vector<16x128xf32>
      %c0_17 = arith.constant 0 : index
      %c0_18 = arith.constant 0 : index
      %40 = vector.load %arg8[%c0_17, %c0_18] : memref<16x128xf32, #tpu.memory_space<vmem>>, vector<16x128xf32>
      tpu.vector_store %arg8[%c0_17, %c0_18], %39 {strides = array<i32>} : memref<16x128xf32, #tpu.memory_space<vmem>>, vector<16x128xf32>,
    } else {
    }
    return
  }
  func.func @transform_0(%arg0: i32, %arg1: i32, %arg2: memref<2xi32, #tpu.memory_space<smem>>, %arg3: memref<2xi32, #tpu.memory_space<smem>>) -> (i32, i32) {
    %c1_i32 = arith.constant 1 : i32
    %0 = arith.muli %arg0, %c1_i32 : i32
    %1 = arith.addi %0, %arg1 : i32
    %2 = arith.index_cast %1 : i32 to index
    %3 = memref.load %arg3[%2] : memref<2xi32, #tpu.memory_space<smem>>
    %c0_i32 = arith.constant 0 : i32
    %c0_i32_0 = arith.constant 0 : i32
    return %c0_i32, %3 : i32, i32
  }
  func.func @transform_1(%arg0: i32, %arg1: i32, %arg2: memref<2xi32, #tpu.memory_space<smem>>, %arg3: memref<2xi32, #tpu.memory_space<smem>>) -> (i32, i32) {
    %c1_i32 = arith.constant 1 : i32
    %0 = arith.muli %arg0, %c1_i32 : i32
    %1 = arith.addi %0, %arg1 : i32
    %2 = arith.index_cast %1 : i32 to index
    %3 = memref.load %arg3[%2] : memref<2xi32, #tpu.memory_space<smem>>
    %c0_i32 = arith.constant 0 : i32
    %c0_i32_0 = arith.constant 0 : i32
    return %c0_i32, %3 : i32, i32
  }
  func.func @transform_2(%arg0: i32, %arg1: i32, %arg2: memref<2xi32, #tpu.memory_space<smem>>, %arg3: memref<2xi32, #tpu.memory_space<smem>>) -> (i32, i32) {
    %c1_i32 = arith.constant 1 : i32
    %0 = arith.muli %arg0, %c1_i32 : i32
    %1 = arith.addi %0, %arg1 : i32
    %2 = arith.index_cast %1 : i32 to index
    %3 = memref.load %arg3[%2] : memref<2xi32, #tpu.memory_space<smem>>
    %c0_i32 = arith.constant 0 : i32
    %c0_i32_0 = arith.constant 0 : i32
    return %c0_i32, %3 : i32, i32
  }
  func.func @transform_3(%arg0: i32, %arg1: i32, %arg2: memref<2xi32, #tpu.memory_space<smem>>, %arg3: memref<2xi32, #tpu.memory_space<smem>>) -> (i32, i32) {
    %c1_i32 = arith.constant 1 : i32
    %0 = arith.muli %arg0, %c1_i32 : i32
    %1 = arith.addi %0, %arg1 : i32
    %2 = arith.index_cast %1 : i32 to index
    %3 = memref.load %arg2[%2] : memref<2xi32, #tpu.memory_space<smem>>
    %c0_i32 = arith.constant 0 : i32
    %c0_i32_0 = arith.constant 0 : i32
    return %c0_i32, %3 : i32, i32
  }
  func.func @transform_4(%arg0: i32, %arg1: i32, %arg2: memref<2xi32, #tpu.memory_space<smem>>, %arg3: memref<2xi32, #tpu.memory_space<smem>>) -> (i32, i32) {
    %c1_i32 = arith.constant 1 : i32
    %0 = arith.muli %arg0, %c1_i32 : i32
    %1 = arith.addi %0, %arg1 : i32
    %2 = arith.index_cast %1 : i32 to index
    %3 = memref.load %arg2[%2] : memref<2xi32, #tpu.memory_space<smem>>
    %c0_i32 = arith.constant 0 : i32
    %c0_i32_0 = arith.constant 0 : i32
    return %c0_i32, %3 : i32, i32
  }
}

</mosaic_0001>

<bundles_post_ra>
// kernel: tpu_custom_call.1
= control target key start
LH: loop header
LB: loop body
LE: loop exit
PB: predicated region body
PF: predicated region fallthrough
CT: control target
= control target key end

     0   :  { %s2097_s27 = smov [#allocation3]   ;;  %s2098_s28 = smov [#allocation4]   ;;  %s3177_s0 = inlined_call_operand.hbm [shape: s32[2], index: 0, kind: input, shape index: {}]   ;;  %s3178_s2 = inlined_call_operand.hbm [shape: s32[1,512], index: 2, kind: input, shape index: {}]   ;;  %s3179_s3 = inlined_call_operand.hbm [shape: s32[1,512], index: 3, kind: input, shape index: {}]   ;;  %s3180_s4 = inlined_call_operand.hbm [shape: f32[16,512], index: 4, kind: input, shape index: {}]   ;;  %s3181_s5 = inlined_call_operand.hbm [shape: f32[16,512], index: 5, kind: output, shape index: {0}]   ;;  %s3182_s6 = inlined_call_operand.hbm [shape: f32[16,512], index: 6, kind: output, shape index: {1}]   ;;  %s3183_s1 = inlined_call_operand.hbm [shape: s32[2], index: 1, kind: input, shape index: {}]  }
   0x1   :  { %3210 = sst [smem:[#allocation44_spill]] %s3178_s2  ;;  %s13_s23 = sshll.u32 %s3177_s0, 4  ;;  %s14_s23 = int_to_ptr.hbm [resolvable:$true] %s13_s23 }
   0x2   :  { %3211 = sst [smem:[#allocation45_spill]] %s3179_s3  ;;  %s18_s26 = sshll.u32 %s3183_s1, 4  ;;  %s19_s26 = int_to_ptr.hbm [resolvable:$true] %s18_s26 }
   0x3   :  { %3212 = sst [smem:[#allocation46_spill]] %s3180_s4 }
   0x4   :  { %3213 = sst [smem:[#allocation47_spill]] %s3181_s5 }
   0x5   :  { %3214 = sst [smem:[#allocation48_spill]] %s3182_s6 }
   0x6   :  { %16 = dma.hbm_to_smem %s14_s23, 16, %s2097_s27, [#allocation2] }
   0x7   :  { %21 = dma.hbm_to_smem %s19_s26, 16, %s2098_s28, [#allocation2] }
   0x8   :  { %2003 = dma.done.wait [#allocation2], 32 }
   0x9   :  { %2004 = vsyncadd [#allocation2], 4294967264 }
   0xa   :  { %24 = sfence }
   0xb   :  { %25 = vsyncpa [#allocation6], 0 }
   0xc   :  { %27 = vsyncpa [#allocation6 + $0x1], 0 }
   0xd   :  { %28 = vsyncpa [#allocation9], 0 }
   0xe   :  { %30 = vsyncpa [#allocation9 + $0x1], 0 }
   0xf   :  { %31 = vsyncpa [#allocation7], 0 }
  0x10   :  { %33 = vsyncpa [#allocation7 + $0x1], 0 }
  0x11   :  { %34 = vsyncpa [#allocation13], 0 }
  0x12   :  { %36 = vsyncpa [#allocation13 + $0x1], 0  ;;  %s2147_s0 = smov 0   ;;  %s2149_s1 = smov 0  }
  0x13   :  { %s2151_s29 = smov 0   ;;  %s2153_s30 = smov 0  }
  0x14   :  { %s2155_s7 = smov 0   ;;  %s2157_s8 = smov 0  }
  0x15   :  { %s2159_s9 = smov 0   ;;  %s2161_s10 = smov 0  }
  0x16   :  { %s2163_s11 = smov 0   ;;  %s2165_s12 = smov 0  }
  0x17   :  { %s2167_s13 = smov 0   ;;  %s2169_s14 = smov 0  }
  0x18   :  { %s2171_s15 = smov 0   ;;  %s2173_s16 = smov 0  }
  0x19   :  { %s2175_s17 = smov 0   ;;  %s2177_s18 = smov 0  }
  0x1a   :  { %s2179_s19 = smov 0   ;;  %s2181_s20 = smov 0  }
  0x1b LB: > { %3215 = sst [smem:[#allocation28_spill]] %s2027_s0  ;;  %s2236_s21 = sadd.s32 4294967295, %s2095_s20   ;;  %s2095_s20 = sphi %s2181_s20, %s42_s20   ;;  %s2091_s19 = sphi %s2179_s19, %s3305_s19   ;;  %s2087_s18 = sphi %s2177_s18, %s3304_s18   ;;  %s2083_s17 = sphi %s2175_s17, %s3303_s17   ;;  %s2079_s16 = sphi %s2173_s16, %s3302_s16   ;;  %s2075_s15 = sphi %s2171_s15, %s3301_s15   ;;  %s2071_s14 = sphi %s2169_s14, %s3288_s14   ;;  %s2067_s13 = sphi %s2167_s13, %s3300_s13   ;;  %s2063_s12 = sphi %s2165_s12, %s3299_s12   ;;  %s2059_s11 = sphi %s2163_s11, %s3298_s11   ;;  %s2055_s10 = sphi %s2161_s10, %s3297_s10   ;;  %s2051_s9 = sphi %s2159_s9, %s3296_s9   ;;  %s2047_s8 = sphi %s2157_s8, %s3295_s8   ;;  %s2043_s7 = sphi %s2155_s7, %s3294_s7   ;;  %s2039_s30 = sphi %s2153_s30, %s3293_s30   ;;  %s2035_s29 = sphi %s2151_s29, %s3283_s29   ;;  %s2031_s1 = sphi %s2149_s1, %s3292_s1   ;;  %s2027_s0 = sphi %s2147_s0, %s3290_s0  }
  0x1c   : > { %3216 = sst [smem:[#allocation29_spill]] %s2035_s29  ;;  %s1278_s22 = sadd.s32 4294967294, %s2095_s20  }
  0x1d   : > { %3217 = sst [smem:[#allocation30_spill]] %s2039_s30  ;;  %s54_s23 = sadd.s32 1, %s2091_s19 }
  0x1e   : > { %3218 = sst [smem:[#allocation31_spill]] %s2047_s8  ;;  %p56_p0 = scmp.ge.s32.totalorder %s54_s23, 2 }
  0x1f   : > { %3219 = sst [smem:[#allocation32_spill]] %s2071_s14  ;;  %p3204_p1 = scmp.eq.s32.totalorder %s2095_s20, 0 }
  0x20   : > { %3220 = sst [smem:[#allocation33_spill]] %s2087_s18  ;;  %p3203_p2 = scmp.eq.s32.totalorder %s2236_s21, 0 }
  0x21   : > { %s89_s24 = sld [smem:[#allocation4 + %s2091_s19]]  ;;  %s3307_s23 = smov (%p56_p0, %s54_s23), 0 }
  0x22   : > { %3221 = sst [smem:[#allocation34_spill]] %s3307_s23  ;;  %s95_s25 = sadd.s32 1, %s2071_s14 }
  0x23   : > { %p108_p3 = scmp.ne.s32.totalorder %s2067_s13, %s2063_s12  ;;  %s91_s26 = sld [smem:[#allocation4 + %s3307_s23]] }
  0x24   : > { %p102_p4 = scmp.ne.s32.totalorder %s2071_s14, %s2067_s13  ;;  %s155_s28 = sadd.s32 1, %s2047_s8 }
  0x25   : > { %p2252_p5 = por %p108_p3, %p3203_p2  ;;  %s149_s6 = sld [smem:[#allocation3 + %s2091_s19]] }
  0x26   : > { %p165_p6 = scmp.ne.s32.totalorder %s2047_s8, %s2043_s7  ;;  %s151_s5 = sld [smem:[#allocation3 + %s3307_s23]] }
  0x27   : > { %s3222_s27 = scalar_select %p2252_p5, 1, 0 }
  0x28   : > { %p166_p7 = scmp.eq.s32.totalorder %s2236_s21, 1  ;;  %p171_p8 = scmp.ne.s32.totalorder %s2043_s7, %s2039_s30 }
  0x29   : > { %3223 = sst [smem:[#allocation35_spill]] %s3222_s27  ;;  %p2264_p9 = scmp.eq.s32.totalorder %s1278_s22, 1 }
  0x2a   : > { %p2270_p10 = por %p166_p7, %p165_p6  ;;  %s179_s27 = sld [smem:[#allocation3 + %s2091_s19]] }
  0x2b   : > { %s92_s4 = ssub.s32 %s89_s24, %s91_s26  ;;  %p2277_p11 = por %p2264_p9, %p171_p8 }
  0x2c   : > { %s3225_s18 = scalar_select %p2270_p10, 1, 0 }
  0x2d   : > { %s3227_s2 = scalar_select %p2277_p11, 1, 0 }
  0x2e   : > { %3226 = sst [smem:[#allocation36_spill]] %s3225_s18  ;;  %p93_p12 = scmp.eq.s32.totalorder %s92_s4, 0 }
  0x2f   : > { %3228 = sst [smem:[#allocation37_spill]] %s3227_s2  ;;  %p2287_p13 = por %p102_p4, %p3204_p1 }
  0x30   : > { %s181_s22 = sld [smem:[#allocation3 + %s3307_s23]]  ;;  %p195_p0 = scmp.ne.s32.totalorder %s2035_s29, %s2031_s1 }
  0x31   : > { %s2294_s18 = scalar_select %p93_p12, %s2071_s14, %s95_s25  }
  0x32   : > { %s152_s24 = ssub.s32 %s149_s6, %s151_s5  ;;  %p2298_p3 = por %p195_p0, %p166_p7 }
  0x33   : > { %3230 = sst [smem:[#allocation38_spill]] %s2294_s18  ;;  %p153_p6 = scmp.eq.s32.totalorder %s152_s24, 0 }
  0x34   : > { %s3231_s4 = scalar_select %p2298_p3, 1, 0 }
  0x35   : > { %p201_p4 = scmp.ne.s32.totalorder %s2031_s1, %s2027_s0  ;;  %s185_s26 = sadd.s32 1, %s2035_s29 }
  0x36   : > { %3232 = sst [smem:[#allocation39_spill]] %s3231_s4  ;;  %s182_s18 = ssub.s32 %s179_s27, %s181_s22 }
  0x37   : > { %s2307_s25 = scalar_select %p153_p6, %s2047_s8, %s155_s28  }
  0x38   : > { %p2311_p12 = por %p201_p4, %p2264_p9  ;;  %p183_p7 = scmp.eq.s32.totalorder %s182_s18, 0 }
  0x39   : > { %3233 = sst [smem:[#allocation40_spill]] %s2307_s25  ;;  %p3200_p0 = scmp.lt.s32.totalorder %s2095_s20, 2 }
  0x3a   : > { %s3234_s5 = scalar_select %p2311_p12, 1, 0 }
  0x3b   : > { %s243_s6 = sand.u32 1, %s2095_s20   ;;  %s245_s24 = sand.u32 1, %s2071_s14  }
  0x3c   : > { %3235 = sst [smem:[#allocation41_spill]] %s3234_s5  ;;  %s1283_s0 = sshll.u32 %s245_s24, 2 }
  0x3d   : > { %s2319_s2 = scalar_select %p183_p7, %s2035_s29, %s185_s26  }
  0x3e   : > { %p2325_p6 = pnand %p3200_p0, %p2287_p13  ;;  %p1288_p9 = scmp.ge.s32.totalorder %s2095_s20, 1 }
  0x3f   : > { %3236 = sst [smem:[#allocation42_spill]] %s2319_s2  ;;  %s247_s12 = scalar_lea.vmem [#allocation8], %s1283_s0 }
  0x40   : > { %s1562_s27 = scalar_select %p2287_p13, [#allocation4], [#allocation15] }
  0x41   : > { %s1563_s18 = scalar_select %p2287_p13, %s2091_s19, 0 }
  0x42   : > { %s3309_s27 = smov (!%p3200_p0, %s1562_s27), [#allocation20]  ;;  %s257_s22 = sshll.u32 %s247_s12, 4  ;;  %s258_s22 = int_to_ptr.vmem [resolvable:$true] %s257_s22 }
  0x43   : > { %s3311_s18 = smov (!%p3200_p0, %s1563_s18), 0  ;;  %p286_p4 = scmp.lt.s32.totalorder %s2095_s20, 3 }
  0x44   : > { %s249_s26 = sld [smem:[%s3309_s27 + %s3311_s18]]  ;;  %s2351_s0 = scalar_lea.sflag [#allocation9], %s243_s6 }
  0x45   : > { %p2340_p7 = pnand %p1288_p9, %p286_p4  ;;  %s59_s25 = sld [smem:[#allocation4 + %s2091_s19]] }
  0x46   : > { %s3239_s3 = sld [smem:[#allocation45_spill]]  ;;  %p1789_p9 = pneg %p2325_p6 }
  0x47   : > { %s61_s29 = sld [smem:[#allocation4 + %s3307_s23]] }
  0x4a   : > { %s1284_s14 = sshll.u32 %s249_s26, 2 }
  0x4c   : > { %s253_s2 = scalar_lea.hbm %s3239_s3, %s1284_s14  ;;  %s1792_s4 = scalar_lea.hbm %s3239_s3, 4 }
  0x4d   : > { %s255_s5 = sshll.u32 %s253_s2, 4  ;;  %s256_s5 = int_to_ptr.hbm [resolvable:$true] %s255_s5 }
  0x4e   : > { %s1785_s27 = sshra.s32 %s256_s5, 4  ;;  %s1786_s27 = int_to_ptr.hbm [resolvable:$true] %s1785_s27 }
  0x4f   : > { %s1787_s18 = scalar_lea.hbm %s1786_s27, 4  ;;  %p1793_p2 = scmp.lt.s32.totalorder %s1786_s27, %s3239_s3 }
  0x50   : > { %p1788_p8 = scmp.ne.s32.totalorder %s1786_s27, %s1787_s18  ;;  %p1794_p1 = scmp.lt.s32.totalorder %s1792_s4, %s1787_s18 }
  0x52   : > { %p1790_p4 = pnand %p1789_p9, %p1788_p8  ;;  %p1795_p13 = por %p1794_p1, %p1793_p2 }
  0x54   : > { %p1791_p0 = pneg %p1790_p4 }
  0x56   : > { %p1796_p12 = pnand %p1795_p13, %p1791_p0 }
  0x58   : > { %1799 = shalt.err (!%p1796_p12)
}
  0x59   : > { %1589 = dma.hbm_to_vmem [thread:$0]  (!%p2325_p6), %s256_s5, 64, %s258_s22, %s2351_s0  }
  0x5a   : > { %p78_p1 = scmp.ne.s32.totalorder %s2079_s16, %s2075_s15  ;;  %s65_s2 = sadd.s32 1, %s2083_s17 }
  0x5b   : > { %p3240_p2 = scmp.ne.s32.totalorder %s2083_s17, %s2079_s16  ;;  %p3241_p8 = scmp.eq.s32.totalorder %s2095_s20, 0 }
  0x5c   : > { %s62_s4 = ssub.s32 %s59_s25, %s61_s29  ;;  %p3242_p0 = scmp.eq.s32.totalorder %s2236_s21, 0 }
  0x5d   : > { %p74_p12 = por %p3241_p8, %p3240_p2  ;;  %p63_p9 = scmp.eq.s32.totalorder %s62_s4, 0 }
  0x5e   : > { %p2374_p13 = por %p3242_p0, %p78_p1  ;;  %s222_s28 = sand.u32 1, %s2083_s17  }
  0x5f   : > { %p3244_p6 = scmp.lt.s32.totalorder %s2095_s20, 2  ;;  %s1281_s29 = sshll.u32 %s222_s28, 2 }
  0x60   : > { %s2386_s5 = scalar_select %p63_p9, %s2083_s17, %s65_s2  }
  0x61   : > { %p2381_p4 = pnand %p3244_p6, %p74_p12  ;;  %p3247_p1 = pmov %p3244_p6 }
  0x62   : > { %3246 = sst [smem:[#allocation43_spill]] %s2386_s5  ;;  %s226_s27 = scalar_lea.vmem [#allocation5], %s1281_s29 }
  0x63   : > { %s1559_s25 = scalar_select %p74_p12, [#allocation4], [#allocation14] }
  0x64   : > { %s1560_s22 = scalar_select %p74_p12, %s2091_s19, 0 }
  0x65   : > { %s3313_s25 = smov (!%p3247_p1, %s1559_s25), [#allocation19]  ;;  %p3248_p2 = pmov %p3247_p1 }
  0x66   : > { %s2393_s18 = sshll.u32 %s226_s27, 4  ;;  %s2396_s12 = sld [smem:[#allocation4 + %s2091_s19]]  ;;  %s237_s18 = int_to_ptr.vmem [resolvable:$true] %s2393_s18 }
  0x67   : > { %s3315_s22 = smov (!%p3248_p2, %s1560_s22), 0  ;;  %s121_s26 = sld [smem:[#allocation4 + %s3307_s23]] }
  0x68   : > { %s228_s30 = sld [smem:[%s3313_s25 + %s3315_s22]]  ;;  %p132_p8 = scmp.ne.s32.totalorder %s2059_s11, %s2055_s10 }
  0x69   : > { %p138_p0 = scmp.ne.s32.totalorder %s2055_s10, %s2051_s9  ;;  %s3249_s4 = sld [smem:[#allocation44_spill]] }
  0x6a   : > { %p3250_p12 = scmp.eq.s32.totalorder %s2236_s21, 0  ;;  %s266_s25 = sand.u32 1, %s2059_s11  }
  0x6b   : > { %p3252_p6 = scmp.eq.s32.totalorder %s2095_s20, 0  ;;  %s223_s9 = scalar_lea.sflag [#allocation6], %s222_s28 }
  0x6c   : > { %p2409_p9 = por %p138_p0, %p3250_p12  ;;  %p1819_p11 = pneg %p2381_p4 }
  0x6d   : > { %p2416_p1 = por %p132_p8, %p3252_p6 }
  0x6e   : > { %s1282_s8 = sshll.u32 %s228_s30, 2 }
  0x6f   : > { %s232_s3 = scalar_lea.hbm %s3249_s4, %s1282_s8 }
  0x70   : > { %s234_s29 = sshll.u32 %s232_s3, 4  ;;  %s1822_s3 = scalar_lea.hbm %s3249_s4, 4  ;;  %s235_s29 = int_to_ptr.hbm [resolvable:$true] %s234_s29 }
  0x71   : > { %s1815_s30 = sshra.s32 %s235_s29, 4  ;;  %s1816_s30 = int_to_ptr.hbm [resolvable:$true] %s1815_s30 }
  0x72   : > { %s1817_s27 = scalar_lea.hbm %s1816_s30, 4  ;;  %p1823_p8 = scmp.lt.s32.totalorder %s1816_s30, %s3249_s4 }
  0x73   : > { %p1818_p2 = scmp.ne.s32.totalorder %s1816_s30, %s1817_s27  ;;  %p1824_p12 = scmp.lt.s32.totalorder %s1822_s3, %s1817_s27 }
  0x75   : > { %p1820_p3 = pnand %p1819_p11, %p1818_p2  ;;  %p1825_p6 = por %p1824_p12, %p1823_p8 }
  0x77   : > { %p1821_p0 = pneg %p1820_p3 }
  0x79   : > { %p1826_p10 = pnand %p1825_p6, %p1821_p0 }
  0x7b   : > { %1829 = shalt.err (!%p1826_p10)
}
  0x7c   : > { %1584 = dma.hbm_to_vmem [thread:$0]  (!%p2381_p4), %s235_s29, 64, %s237_s18, %s223_s9  }
  0x7d   : > { %s122_s28 = ssub.s32 %s2396_s12, %s121_s26  ;;  %s125_s23 = sadd.s32 1, %s2059_s11 }
  0x7e   : > { %p123_p11 = scmp.eq.s32.totalorder %s122_s28, 0  ;;  %s1285_s30 = sshll.u32 %s266_s25, 6 }
  0x7f   : > { %s1565_s27 = scalar_select %p2416_p1, [#allocation4], [#allocation16] }
  0x80   : > { %s2435_s8 = scalar_select %p123_p11, %s2059_s11, %s125_s23  }
  0x81   : > { %s1566_s15 = scalar_select %p2416_p1, %s2091_s19, 0 }
  0x82   : > { %p3254_p10 = scmp.lt.s32.totalorder %s2095_s20, 2  ;;  %s268_s12 = scalar_lea.vmem [#allocation10], %s1285_s30 }
  0x83   : > { %s278_s26 = sshll.u32 %s268_s12, 4  ;;  %s3258_s3 = sld [smem:[#allocation46_spill]]  ;;  %s279_s26 = int_to_ptr.vmem [resolvable:$true] %s278_s26 }
  0x84   : > { %s3317_s27 = smov (!%p3254_p10, %s1565_s27), [#allocation21]  ;;  %p3255_p3 = pmov %p3254_p10 }
  0x86   : > { %s3319_s15 = smov (!%p3255_p3, %s1566_s15), 0  ;;  %p3256_p2 = pmov %p3255_p3 }
  0x87   : > { %s270_s18 = sld [smem:[%s3317_s27 + %s3319_s15]] }
  0x88   : > { %p2448_p0 = pnand %p3256_p2, %p2416_p1 }
  0x89   : > { %s1852_s30 = scalar_lea.hbm %s3258_s3, 64 }
  0x8a   : > { %p1849_p1 = pneg %p2448_p0 }
  0x8d   : > { %s1558_s29 = sshll.u32 %s270_s18, 5 }
  0x8e   : > { %s275_s2 = scalar_lea.hbm %s3258_s3, %s1558_s29 }
  0x8f   : > { %s276_s28 = sshll.u32 %s275_s2, 4  ;;  %s277_s28 = int_to_ptr.hbm [resolvable:$true] %s276_s28 }
  0x90   : > { %s1845_s23 = sshra.s32 %s277_s28, 4  ;;  %s1846_s23 = int_to_ptr.hbm [resolvable:$true] %s1845_s23 }
  0x91   : > { %s1847_s22 = scalar_lea.hbm %s1846_s23, 64  ;;  %p1853_p6 = scmp.lt.s32.totalorder %s1846_s23, %s3258_s3 }
  0x92   : > { %p1848_p4 = scmp.ne.s32.totalorder %s1846_s23, %s1847_s22  ;;  %p1854_p11 = scmp.lt.s32.totalorder %s1852_s30, %s1847_s22 }
  0x94   : > { %p1850_p8 = pnand %p1849_p1, %p1848_p4  ;;  %p1855_p10 = por %p1854_p11, %p1853_p6 }
  0x96   : > { %p1851_p12 = pneg %p1850_p8 }
  0x98   : > { %p1856_p3 = pnand %p1855_p10, %p1851_p12 }
  0x9a   : > { %1859 = shalt.err (!%p1856_p3)
}
  0x9b   : > { %s2099_s12 = smov 512   ;;  %s2100_s29 = smov 32  }
  0x9c   : > { %1594 = dma.hbm_to_vmem [thread:$0]  (!%p2448_p0), %s277_s28, 1024, %s279_s26, %s2351_s0, %s2099_s12, %s2099_s12, %s2100_s29  }
  0x9d   : > { %290 = sbr.rel (%p2340_p7) target bundleno = 521 (0x209), region = 32  ;;  %s292_s4 = sand.u32 (!%p2340_p7), 1, %s2079_s16  }
  0x9e   : > { %s2469_s25 = sshll.u32 (!%p2340_p7), %s292_s4, 2  ;;  %s293_s9 = scalar_lea.sflag (!%p2340_p7), [#allocation6], %s292_s4 }
  0x9f   : > { %s296_s2 = scalar_lea.vmem (!%p2340_p7), [#allocation5], %s2469_s25 }
  0xa2   : > { %2006 = dma.done.wait (%p2374_p13), %s293_s9, 64  }
  0xa3   : > { %2008 = vsyncadd (%p2374_p13), %s293_s9, 4294967232  ;;  %s302_s0 = sand.u32 1, %s2236_s21   ;;  %s304_s26 = sand.u32 1, %s2067_s13  }
  0xa4   : > { %s2478_s24 = sshll.u32 %s304_s26, 2  ;;  %s303_s28 = scalar_lea.sflag [#allocation9], %s302_s0 }
  0xa5   : > { %s306_s23 = scalar_lea.vmem [#allocation8], %s2478_s24 }
  0xa6   : > { %2010 = dma.done.wait (%p2252_p5), %s303_s28, 64  }
  0xa7   : > { %2012 = vsyncadd (%p2252_p5), %s303_s28, 4294967232  ;;  %s314_s22 = sand.u32 1, %s2055_s10  }
  0xa8   : > { %s1291_s6 = sshll.u32 %s314_s22, 6 }
  0xa9   : > { %s2486_s27 = scalar_lea.vmem [#allocation10], %s1291_s6 }
  0xaa   : > { %2014 = dma.done.wait (%p2409_p9), %s303_s28, 1024  }
  0xab   : > { %2016 = vsyncadd (%p2409_p9), %s303_s28, 4294966272  ;;  %s3260_s21 = sld [smem:[#allocation33_spill]]  ;;  %s347_s30 = sand.u32 1, %s2043_s7   ;;  %v2101_v0 = vmov 0.0  }
  0xac   : > { %s354_s15 = sand.u32 1, %s2031_s1   ;;  %s1292_s12 = sshll.u32 %s347_s30, 4 }
  0xad   : > { %s1293_s29 = sshll.u32 %s354_s15, 4  ;;  %s2499_s4 = scalar_lea.vmem [#allocation11], %s1292_s12 }
  0xae   : > { %390 = vst [vmem:[%s2499_s4] sm:$0xff] %v2101_v0  ;;  %s2503_s5 = scalar_lea.vmem [#allocation12], %s1293_s29 }
  0xaf   : > { %391 = vst [vmem:[%s2499_s4 + $0x8] sm:$0xff] %v2101_v0 }
  0xb0   : > { %392 = vst [vmem:[%s2503_s5] sm:$0xff] %v2101_v0 }
  0xb1   : > { %s371_s18 = sld [smem:[#allocation3 + %s3260_s21]]  ;;  %393 = vst [vmem:[%s2503_s5 + $0x8] sm:$0xff] %v2101_v0 }
  0xb7   : > { %p1294_p5 = scmp.ge.s32.totalorder %s371_s18, 2 }
  0xb8   : > { %s1295_s9 = sshll.u32 (!%p1294_p5), %s371_s18, 7 }
  0xb9   : > { %397 = sbr.rel (%p1294_p5) target bundleno = 473 (0x1d9), region = 52 }
  0xbe   : > { %v399_v1 = vlaneseq  ;;  %v441_v2 = vld [vmem:[%s296_s2] sm:$0xf]  ;;  %v2511_v4 = vstv %s1295_s9  ;;  %v2102_v14 = vmov 1.0   ;;  %v736_v40 = vld [vmem:[%s306_s23] sm:$0xf]  ;;  %v2853_v48 = vld [vmem:[%s2486_s27] sm:$0xff] }
  0xbf   : > { %v2513_v5 = vperm.slane %v441_v2, 2  ;;  %v2515_v6 = vperm.slane %v441_v2, 3  ;;  %v2518_v8 = vperm.slane %v441_v2, 0  ;;  %v2520_v9 = vperm.slane %v441_v2, 1  ;;  %v2834_v46 = vld [vmem:[%s2486_s27 + $0x10] sm:$0xff]  ;;  %v2850_v47 = vld [vmem:[%s2486_s27 + $0x18] sm:$0xff] }
  0xc0   : > { %v2509_v3 = vshrl.u32 %v399_v1, 7  ;;  %v2763_v42 = vperm.slane %v736_v40, 2  ;;  %v2765_v43 = vperm.slane %v736_v40, 3  ;;  %v2769_v44 = vperm.slane %v736_v40, 0  ;;  %v2856_v49 = vld [vmem:[%s2486_s27 + $0x8] sm:$0xff]  ;;  %v2874_v50 = vld [vmem:[%s2486_s27 + $0x30] sm:$0xff] }
  0xc1   : > { %v2771_v45 = vperm.slane %v736_v40, 1  ;;  %v2890_v51 = vld [vmem:[%s2486_s27 + $0x38] sm:$0xff]  ;;  %v2893_v52 = vld [vmem:[%s2486_s27 + $0x20] sm:$0xff]  ;;  %v2896_v53 = vld [vmem:[%s2486_s27 + $0x28] sm:$0xff] }
  0xc2   : > { %v415_v7 = vadd.s32 120, %v2509_v3  ;;  %v414_v10 = vadd.s32 112, %v2509_v3  ;;  %v413_v13 = vadd.s32 104, %v2509_v3  ;;  %v412_v16 = vadd.s32 96, %v2509_v3  ;;  %v638_v59 = vld [vmem:[%s2499_s4] sm:$0xff] }
  0xc3   : > { %v411_v18 = vadd.s32 88, %v2509_v3  ;;  %v410_v20 = vadd.s32 80, %v2509_v3  ;;  %v409_v22 = vadd.s32 72, %v2509_v3  ;;  %v408_v24 = vadd.s32 64, %v2509_v3 }
  0xc4   : > { %v2524_v11 = vadd.s32 %v2511_v4, %v415_v7  ;;  %v2527_v12 = vadd.s32 %v2511_v4, %v414_v10  ;;  %v2547_v15 = vadd.s32 %v2511_v4, %v413_v13  ;;  %v2563_v17 = vadd.s32 %v2511_v4, %v412_v16 }
  0xc5   : > { %v2579_v19 = vadd.s32 %v2511_v4, %v411_v18  ;;  %v2595_v21 = vadd.s32 %v2511_v4, %v410_v20  ;;  %v2611_v23 = vadd.s32 %v2511_v4, %v409_v22  ;;  %v2627_v25 = vadd.s32 %v2511_v4, %v408_v24 }
  0xc6   : > { %vm508_vm0 = vcmp.eq.s32.totalorder %v2513_v5, %v2524_v11  ;;  %vm509_vm1 = vcmp.eq.s32.totalorder %v2515_v6, %v2524_v11  ;;  %vm506_vm2 = vcmp.eq.s32.totalorder %v2518_v8, %v2524_v11  ;;  %vm507_vm3 = vcmp.eq.s32.totalorder %v2520_v9, %v2524_v11 }
  0xc7   : > { %1392 = vmatpush.xpose.msk.msra.mxu2 %vm508_vm0, %v2102_v14  ;;  %1408 = vmatpush.xpose.msk.msra.mxu3 %vm509_vm1, %v2102_v14  ;;  %vm504_vm4 = vcmp.eq.s32.totalorder %v2513_v5, %v2527_v12  ;;  %vm505_vm5 = vcmp.eq.s32.totalorder %v2515_v6, %v2527_v12  ;;  %vm502_vm6 = vcmp.eq.s32.totalorder %v2518_v8, %v2527_v12  ;;  %v407_v26 = vadd.s32 56, %v2509_v3 }
  0xc8   : > { %1360 = vmatpush.xpose.msk.msra.mxu0 %vm506_vm2, %v2102_v14  ;;  %1376 = vmatpush.xpose.msk.msra.mxu1 %vm507_vm3, %v2102_v14  ;;  %vm503_vm7 = vcmp.eq.s32.totalorder %v2520_v9, %v2527_v12  ;;  %vm500_vm8 = vcmp.eq.s32.totalorder %v2513_v5, %v2547_v15  ;;  %vm501_vm9 = vcmp.eq.s32.totalorder %v2515_v6, %v2547_v15  ;;  %v406_v28 = vadd.s32 48, %v2509_v3 }
  0xc9   : > { %vm498_vm10 = vcmp.eq.s32.totalorder %v2518_v8, %v2547_v15  ;;  %vm499_vm11 = vcmp.eq.s32.totalorder %v2520_v9, %v2547_v15  ;;  %vm496_vm12 = vcmp.eq.s32.totalorder %v2513_v5, %v2563_v17  ;;  %vm497_vm13 = vcmp.eq.s32.totalorder %v2515_v6, %v2563_v17 }
  0xca   : > { %vm494_vm14 = vcmp.eq.s32.totalorder %v2518_v8, %v2563_v17  ;;  %vm495_vm15 = vcmp.eq.s32.totalorder %v2520_v9, %v2563_v17  ;;  %vm492_vm0 = vcmp.eq.s32.totalorder %v2513_v5, %v2579_v19  ;;  %vm493_vm1 = vcmp.eq.s32.totalorder %v2515_v6, %v2579_v19 }
  0xcb   : > { %1393 = vmatpush.xpose.msk.msra.mxu2 %vm504_vm4, %v2102_v14  ;;  %1409 = vmatpush.xpose.msk.msra.mxu3 %vm505_vm5, %v2102_v14  ;;  %vm490_vm2 = vcmp.eq.s32.totalorder %v2518_v8, %v2579_v19  ;;  %vm491_vm3 = vcmp.eq.s32.totalorder %v2520_v9, %v2579_v19  ;;  %vm488_vm4 = vcmp.eq.s32.totalorder %v2513_v5, %v2595_v21  ;;  %v405_v30 = vadd.s32 40, %v2509_v3 }
  0xcc   : > { %1361 = vmatpush.xpose.msk.msra.mxu0 %vm502_vm6, %v2102_v14  ;;  %1377 = vmatpush.xpose.msk.msra.mxu1 %vm503_vm7, %v2102_v14  ;;  %vm489_vm5 = vcmp.eq.s32.totalorder %v2515_v6, %v2595_v21  ;;  %vm486_vm6 = vcmp.eq.s32.totalorder %v2518_v8, %v2595_v21  ;;  %vm487_vm7 = vcmp.eq.s32.totalorder %v2520_v9, %v2595_v21  ;;  %v404_v32 = vadd.s32 32, %v2509_v3 }
  0xcd   : > { %v2643_v27 = vadd.s32 %v2511_v4, %v407_v26  ;;  %v2659_v29 = vadd.s32 %v2511_v4, %v406_v28  ;;  %v2675_v31 = vadd.s32 %v2511_v4, %v405_v30  ;;  %v403_v34 = vadd.s32 24, %v2509_v3 }
  0xce   : > { %v2691_v33 = vadd.s32 %v2511_v4, %v404_v32  ;;  %v402_v36 = vadd.s32 16, %v2509_v3  ;;  %v401_v38 = vadd.s32 8, %v2509_v3  ;;  %v2757_v41 = vadd.s32 %v2511_v4, %v2509_v3 }
  0xcf   : > { %1394 = vmatpush.xpose.msk.msra.mxu2 %vm500_vm8, %v2102_v14  ;;  %1410 = vmatpush.xpose.msk.msra.mxu3 %vm501_vm9, %v2102_v14  ;;  %vm484_vm8 = vcmp.eq.s32.totalorder %v2513_v5, %v2611_v23  ;;  %vm485_vm9 = vcmp.eq.s32.totalorder %v2515_v6, %v2611_v23  ;;  %v2707_v35 = vadd.s32 %v2511_v4, %v403_v34 }
  0xd0   : > { %1362 = vmatpush.xpose.msk.msra.mxu0 %vm498_vm10, %v2102_v14  ;;  %1378 = vmatpush.xpose.msk.msra.mxu1 %vm499_vm11, %v2102_v14  ;;  %vm482_vm10 = vcmp.eq.s32.totalorder %v2518_v8, %v2611_v23  ;;  %vm483_vm11 = vcmp.eq.s32.totalorder %v2520_v9, %v2611_v23  ;;  %v2723_v37 = vadd.s32 %v2511_v4, %v402_v36 }
  0xd1   : > { %v2739_v39 = vadd.s32 %v2511_v4, %v401_v38  ;;  %v639_v4 = vld [vmem:[%s2499_s4 + $0x8] sm:$0xff] }
  0xd3   : > { %1395 = vmatpush.xpose.msk.msra.mxu2 %vm496_vm12, %v2102_v14  ;;  %1411 = vmatpush.xpose.msk.msra.mxu3 %vm497_vm13, %v2102_v14  ;;  %vm480_vm12 = vcmp.eq.s32.totalorder %v2513_v5, %v2627_v25  ;;  %vm481_vm13 = vcmp.eq.s32.totalorder %v2515_v6, %v2627_v25 }
  0xd4   : > { %1363 = vmatpush.xpose.msk.msra.mxu0 %vm494_vm14, %v2102_v14  ;;  %1379 = vmatpush.xpose.msk.msra.mxu1 %vm495_vm15, %v2102_v14  ;;  %vm478_vm14 = vcmp.eq.s32.totalorder %v2518_v8, %v2627_v25  ;;  %vm479_vm15 = vcmp.eq.s32.totalorder %v2520_v9, %v2627_v25 }
  0xd7   : > { %1396 = vmatpush.xpose.msk.msra.mxu2 %vm492_vm0, %v2102_v14  ;;  %1412 = vmatpush.xpose.msk.msra.mxu3 %vm493_vm1, %v2102_v14  ;;  %vm476_vm0 = vcmp.eq.s32.totalorder %v2513_v5, %v2643_v27  ;;  %vm477_vm1 = vcmp.eq.s32.totalorder %v2515_v6, %v2643_v27 }
  0xd8   : > { %1364 = vmatpush.xpose.msk.msra.mxu0 %vm490_vm2, %v2102_v14  ;;  %1380 = vmatpush.xpose.msk.msra.mxu1 %vm491_vm3, %v2102_v14  ;;  %vm474_vm2 = vcmp.eq.s32.totalorder %v2518_v8, %v2643_v27  ;;  %vm475_vm3 = vcmp.eq.s32.totalorder %v2520_v9, %v2643_v27 }
  0xdb   : > { %1397 = vmatpush.xpose.msk.msra.mxu2 %vm488_vm4, %v2102_v14  ;;  %1413 = vmatpush.xpose.msk.msra.mxu3 %vm489_vm5, %v2102_v14  ;;  %vm472_vm4 = vcmp.eq.s32.totalorder %v2513_v5, %v2659_v29  ;;  %vm473_vm5 = vcmp.eq.s32.totalorder %v2515_v6, %v2659_v29 }
  0xdc   : > { %1365 = vmatpush.xpose.msk.msra.mxu0 %vm486_vm6, %v2102_v14  ;;  %1381 = vmatpush.xpose.msk.msra.mxu1 %vm487_vm7, %v2102_v14  ;;  %vm470_vm6 = vcmp.eq.s32.totalorder %v2518_v8, %v2659_v29  ;;  %vm471_vm7 = vcmp.eq.s32.totalorder %v2520_v9, %v2659_v29 }
  0xdf   : > { %1398 = vmatpush.xpose.msk.msra.mxu2 %vm484_vm8, %v2102_v14  ;;  %1414 = vmatpush.xpose.msk.msra.mxu3 %vm485_vm9, %v2102_v14  ;;  %vm468_vm8 = vcmp.eq.s32.totalorder %v2513_v5, %v2675_v31  ;;  %vm469_vm9 = vcmp.eq.s32.totalorder %v2515_v6, %v2675_v31 }
  0xe0   : > { %1366 = vmatpush.xpose.msk.msra.mxu0 %vm482_vm10, %v2102_v14  ;;  %1382 = vmatpush.xpose.msk.msra.mxu1 %vm483_vm11, %v2102_v14  ;;  %vm466_vm10 = vcmp.eq.s32.totalorder %v2518_v8, %v2675_v31  ;;  %vm467_vm11 = vcmp.eq.s32.totalorder %v2520_v9, %v2675_v31 }
  0xe3   : > { %1399 = vmatpush.xpose.msk.msra.mxu2 %vm480_vm12, %v2102_v14  ;;  %1415 = vmatpush.xpose.msk.msra.mxu3 %vm481_vm13, %v2102_v14  ;;  %vm464_vm12 = vcmp.eq.s32.totalorder %v2513_v5, %v2691_v33  ;;  %vm465_vm13 = vcmp.eq.s32.totalorder %v2515_v6, %v2691_v33 }
  0xe4   : > { %1367 = vmatpush.xpose.msk.msra.mxu0 %vm478_vm14, %v2102_v14  ;;  %1383 = vmatpush.xpose.msk.msra.mxu1 %vm479_vm15, %v2102_v14  ;;  %vm462_vm14 = vcmp.eq.s32.totalorder %v2518_v8, %v2691_v33  ;;  %vm463_vm15 = vcmp.eq.s32.totalorder %v2520_v9, %v2691_v33 }
  0xe7   : > { %1400 = vmatpush.xpose.msk.msra.mxu2 %vm476_vm0, %v2102_v14  ;;  %1416 = vmatpush.xpose.msk.msra.mxu3 %vm477_vm1, %v2102_v14  ;;  %vm460_vm0 = vcmp.eq.s32.totalorder %v2513_v5, %v2707_v35  ;;  %vm461_vm1 = vcmp.eq.s32.totalorder %v2515_v6, %v2707_v35 }
  0xe8   : > { %1368 = vmatpush.xpose.msk.msra.mxu0 %vm474_vm2, %v2102_v14  ;;  %1384 = vmatpush.xpose.msk.msra.mxu1 %vm475_vm3, %v2102_v14  ;;  %vm458_vm2 = vcmp.eq.s32.totalorder %v2518_v8, %v2707_v35  ;;  %vm459_vm3 = vcmp.eq.s32.totalorder %v2520_v9, %v2707_v35 }
  0xeb   : > { %1401 = vmatpush.xpose.msk.msra.mxu2 %vm472_vm4, %v2102_v14  ;;  %1417 = vmatpush.xpose.msk.msra.mxu3 %vm473_vm5, %v2102_v14  ;;  %vm456_vm4 = vcmp.eq.s32.totalorder %v2513_v5, %v2723_v37  ;;  %vm457_vm5 = vcmp.eq.s32.totalorder %v2515_v6, %v2723_v37 }
  0xec   : > { %1369 = vmatpush.xpose.msk.msra.mxu0 %vm470_vm6, %v2102_v14  ;;  %1385 = vmatpush.xpose.msk.msra.mxu1 %vm471_vm7, %v2102_v14  ;;  %vm454_vm6 = vcmp.eq.s32.totalorder %v2518_v8, %v2723_v37  ;;  %vm455_vm7 = vcmp.eq.s32.totalorder %v2520_v9, %v2723_v37 }
  0xef   : > { %1402 = vmatpush.xpose.msk.msra.mxu2 %vm468_vm8, %v2102_v14  ;;  %1418 = vmatpush.xpose.msk.msra.mxu3 %vm469_vm9, %v2102_v14  ;;  %vm452_vm8 = vcmp.eq.s32.totalorder %v2513_v5, %v2739_v39  ;;  %vm453_vm9 = vcmp.eq.s32.totalorder %v2515_v6, %v2739_v39 }
  0xf0   : > { %1370 = vmatpush.xpose.msk.msra.mxu0 %vm466_vm10, %v2102_v14  ;;  %1386 = vmatpush.xpose.msk.msra.mxu1 %vm467_vm11, %v2102_v14  ;;  %vm450_vm10 = vcmp.eq.s32.totalorder %v2518_v8, %v2739_v39  ;;  %vm451_vm11 = vcmp.eq.s32.totalorder %v2520_v9, %v2739_v39 }
  0xf3   : > { %1403 = vmatpush.xpose.msk.msra.mxu2 %vm464_vm12, %v2102_v14  ;;  %1419 = vmatpush.xpose.msk.msra.mxu3 %vm465_vm13, %v2102_v14  ;;  %vm448_vm12 = vcmp.eq.s32.totalorder %v2513_v5, %v2757_v41  ;;  %vm449_vm13 = vcmp.eq.s32.totalorder %v2515_v6, %v2757_v41 }
  0xf4   : > { %1371 = vmatpush.xpose.msk.msra.mxu0 %vm462_vm14, %v2102_v14  ;;  %1387 = vmatpush.xpose.msk.msra.mxu1 %vm463_vm15, %v2102_v14  ;;  %vm803_vm14 = vcmp.eq.s32.totalorder %v2763_v42, %v2524_v11  ;;  %vm804_vm15 = vcmp.eq.s32.totalorder %v2765_v43, %v2524_v11 }
  0xf7   : > { %1404 = vmatpush.xpose.msk.msra.mxu2 %vm460_vm0, %v2102_v14  ;;  %1420 = vmatpush.xpose.msk.msra.mxu3 %vm461_vm1, %v2102_v14  ;;  %vm446_vm0 = vcmp.eq.s32.totalorder %v2518_v8, %v2757_v41  ;;  %vm447_vm1 = vcmp.eq.s32.totalorder %v2520_v9, %v2757_v41 }
  0xf8   : > { %1372 = vmatpush.xpose.msk.msra.mxu0 %vm458_vm2, %v2102_v14  ;;  %1388 = vmatpush.xpose.msk.msra.mxu1 %vm459_vm3, %v2102_v14  ;;  %vm801_vm2 = vcmp.eq.s32.totalorder %v2769_v44, %v2524_v11  ;;  %vm802_vm3 = vcmp.eq.s32.totalorder %v2771_v45, %v2524_v11 }
  0xfb   : > { %1405 = vmatpush.xpose.msk.msra.mxu2 %vm456_vm4, %v2102_v14  ;;  %1421 = vmatpush.xpose.msk.msra.mxu3 %vm457_vm5, %v2102_v14  ;;  %vm799_vm4 = vcmp.eq.s32.totalorder %v2763_v42, %v2527_v12  ;;  %vm800_vm5 = vcmp.eq.s32.totalorder %v2765_v43, %v2527_v12 }
  0xfc   : > { %1373 = vmatpush.xpose.msk.msra.mxu0 %vm454_vm6, %v2102_v14  ;;  %1389 = vmatpush.xpose.msk.msra.mxu1 %vm455_vm7, %v2102_v14  ;;  %vm797_vm6 = vcmp.eq.s32.totalorder %v2769_v44, %v2527_v12  ;;  %vm798_vm7 = vcmp.eq.s32.totalorder %v2771_v45, %v2527_v12 }
  0xff   : > { %1406 = vmatpush.xpose.msk.msra.mxu2 %vm452_vm8, %v2102_v14  ;;  %1422 = vmatpush.xpose.msk.msra.mxu3 %vm453_vm9, %v2102_v14  ;;  %vm795_vm8 = vcmp.eq.s32.totalorder %v2763_v42, %v2547_v15  ;;  %vm796_vm9 = vcmp.eq.s32.totalorder %v2765_v43, %v2547_v15 }
 0x100   : > { %1374 = vmatpush.xpose.msk.msra.mxu0 %vm450_vm10, %v2102_v14  ;;  %1390 = vmatpush.xpose.msk.msra.mxu1 %vm451_vm11, %v2102_v14  ;;  %vm793_vm10 = vcmp.eq.s32.totalorder %v2769_v44, %v2547_v15  ;;  %vm794_vm11 = vcmp.eq.s32.totalorder %v2771_v45, %v2547_v15 }
 0x103   : > { %1407 = vmatpush.xpose.msk.msra.mxu2 %vm448_vm12, %v2102_v14  ;;  %1423 = vmatpush.xpose.msk.msra.mxu3 %vm449_vm13, %v2102_v14  ;;  %vm791_vm12 = vcmp.eq.s32.totalorder %v2763_v42, %v2563_v17  ;;  %vm792_vm13 = vcmp.eq.s32.totalorder %v2765_v43, %v2563_v17 }
 0x104   : > { %1375 = vmatpush.xpose.msk.msra.mxu0 %vm446_vm0, %v2102_v14  ;;  %1391 = vmatpush.xpose.msk.msra.mxu1 %vm447_vm1, %v2102_v14  ;;  %vm787_vm0 = vcmp.eq.s32.totalorder %v2763_v42, %v2579_v19  ;;  %vm788_vm1 = vcmp.eq.s32.totalorder %v2765_v43, %v2579_v19 }
 0x106   : > { %702 = vmatmul.f32.vlgmr.msra.gmra.mxu2 %v2834_v46  ;;  %725 = vmatmul.f32.vlgmr.msra.gmra.mxu3 %v2850_v47 }
 0x107   : > { %1520 = vmatpush.xpose.msk.msrb.mxu2 %vm803_vm14, %v2102_v14  ;;  %1536 = vmatpush.xpose.msk.msrb.mxu3 %vm804_vm15, %v2102_v14  ;;  %vm789_vm14 = vcmp.eq.s32.totalorder %v2769_v44, %v2563_v17  ;;  %vm790_vm15 = vcmp.eq.s32.totalorder %v2771_v45, %v2563_v17 }
 0x108   : > { %1488 = vmatpush.xpose.msk.msrb.mxu0 %vm801_vm2, %v2102_v14  ;;  %1504 = vmatpush.xpose.msk.msrb.mxu1 %vm802_vm3, %v2102_v14  ;;  %vm785_vm2 = vcmp.eq.s32.totalorder %v2769_v44, %v2579_v19  ;;  %vm786_vm3 = vcmp.eq.s32.totalorder %v2771_v45, %v2579_v19 }
 0x109   : > { %656 = vmatmul.f32.vlgmr.msra.gmra.mxu0 %v2853_v48  ;;  %679 = vmatmul.f32.vlgmr.msra.gmra.mxu1 %v2856_v49 }
 0x10b   : > { %1521 = vmatpush.xpose.msk.msrb.mxu2 %vm799_vm4, %v2102_v14  ;;  %1537 = vmatpush.xpose.msk.msrb.mxu3 %vm800_vm5, %v2102_v14  ;;  %vm783_vm4 = vcmp.eq.s32.totalorder %v2763_v42, %v2595_v21  ;;  %vm784_vm5 = vcmp.eq.s32.totalorder %v2765_v43, %v2595_v21 }
 0x10c   : > { %1489 = vmatpush.xpose.msk.msrb.mxu0 %vm797_vm6, %v2102_v14  ;;  %1505 = vmatpush.xpose.msk.msrb.mxu1 %vm798_vm7, %v2102_v14  ;;  %vm781_vm6 = vcmp.eq.s32.totalorder %v2769_v44, %v2595_v21  ;;  %vm782_vm7 = vcmp.eq.s32.totalorder %v2771_v45, %v2595_v21 }
 0x10e   : > { %705 = vmatmul.f32.gmra.mxu2 %v2874_v50  ;;  %728 = vmatmul.f32.gmra.mxu3 %v2890_v51 }
 0x10f   : > { %1522 = vmatpush.xpose.msk.msrb.mxu2 %vm795_vm8, %v2102_v14  ;;  %1538 = vmatpush.xpose.msk.msrb.mxu3 %vm796_vm9, %v2102_v14  ;;  %vm779_vm8 = vcmp.eq.s32.totalorder %v2763_v42, %v2611_v23  ;;  %vm780_vm9 = vcmp.eq.s32.totalorder %v2765_v43, %v2611_v23 }
 0x110   : > { %1490 = vmatpush.xpose.msk.msrb.mxu0 %vm793_vm10, %v2102_v14  ;;  %1506 = vmatpush.xpose.msk.msrb.mxu1 %vm794_vm11, %v2102_v14  ;;  %vm777_vm10 = vcmp.eq.s32.totalorder %v2769_v44, %v2611_v23  ;;  %vm778_vm11 = vcmp.eq.s32.totalorder %v2771_v45, %v2611_v23  ;;  %v934_v23 = vld [vmem:[%s2503_s5 + $0x8] sm:$0xff] }
 0x111   : > { %659 = vmatmul.f32.gmra.mxu0 %v2893_v52  ;;  %682 = vmatmul.f32.gmra.mxu1 %v2896_v53 }
 0x113   : > { %1523 = vmatpush.xpose.msk.msrb.mxu2 %vm791_vm12, %v2102_v14  ;;  %1539 = vmatpush.xpose.msk.msrb.mxu3 %vm792_vm13, %v2102_v14  ;;  %vm775_vm12 = vcmp.eq.s32.totalorder %v2763_v42, %v2627_v25  ;;  %vm776_vm13 = vcmp.eq.s32.totalorder %v2765_v43, %v2627_v25 }
 0x114   : > { %1491 = vmatpush.xpose.msk.msrb.mxu0 %vm789_vm14, %v2102_v14  ;;  %1507 = vmatpush.xpose.msk.msrb.mxu1 %vm790_vm15, %v2102_v14  ;;  %vm773_vm14 = vcmp.eq.s32.totalorder %v2769_v44, %v2627_v25  ;;  %vm774_vm15 = vcmp.eq.s32.totalorder %v2771_v45, %v2627_v25 }
 0x117   : > { %1524 = vmatpush.xpose.msk.msrb.mxu2 %vm787_vm0, %v2102_v14  ;;  %1540 = vmatpush.xpose.msk.msrb.mxu3 %vm788_vm1, %v2102_v14  ;;  %vm771_vm0 = vcmp.eq.s32.totalorder %v2763_v42, %v2643_v27  ;;  %vm772_vm1 = vcmp.eq.s32.totalorder %v2765_v43, %v2643_v27 }
 0x118   : > { %1492 = vmatpush.xpose.msk.msrb.mxu0 %vm785_vm2, %v2102_v14  ;;  %1508 = vmatpush.xpose.msk.msrb.mxu1 %vm786_vm3, %v2102_v14  ;;  %vm769_vm2 = vcmp.eq.s32.totalorder %v2769_v44, %v2643_v27  ;;  %vm770_vm3 = vcmp.eq.s32.totalorder %v2771_v45, %v2643_v27 }
 0x11b   : > { %1525 = vmatpush.xpose.msk.msrb.mxu2 %vm783_vm4, %v2102_v14  ;;  %1541 = vmatpush.xpose.msk.msrb.mxu3 %vm784_vm5, %v2102_v14  ;;  %vm767_vm4 = vcmp.eq.s32.totalorder %v2763_v42, %v2659_v29  ;;  %vm768_vm5 = vcmp.eq.s32.totalorder %v2765_v43, %v2659_v29 }
 0x11c   : > { %1493 = vmatpush.xpose.msk.msrb.mxu0 %vm781_vm6, %v2102_v14  ;;  %1509 = vmatpush.xpose.msk.msrb.mxu1 %vm782_vm7, %v2102_v14  ;;  %vm765_vm6 = vcmp.eq.s32.totalorder %v2769_v44, %v2659_v29  ;;  %vm766_vm7 = vcmp.eq.s32.totalorder %v2771_v45, %v2659_v29 }
 0x11f   : > { %1526 = vmatpush.xpose.msk.msrb.mxu2 %vm779_vm8, %v2102_v14  ;;  %1542 = vmatpush.xpose.msk.msrb.mxu3 %vm780_vm9, %v2102_v14  ;;  %vm763_vm8 = vcmp.eq.s32.totalorder %v2763_v42, %v2675_v31  ;;  %vm764_vm9 = vcmp.eq.s32.totalorder %v2765_v43, %v2675_v31 }
 0x120   : > { %1494 = vmatpush.xpose.msk.msrb.mxu0 %vm777_vm10, %v2102_v14  ;;  %1510 = vmatpush.xpose.msk.msrb.mxu1 %vm778_vm11, %v2102_v14  ;;  %vm761_vm10 = vcmp.eq.s32.totalorder %v2769_v44, %v2675_v31  ;;  %vm762_vm11 = vcmp.eq.s32.totalorder %v2771_v45, %v2675_v31 }
 0x123   : > { %1527 = vmatpush.xpose.msk.msrb.mxu2 %vm775_vm12, %v2102_v14  ;;  %1543 = vmatpush.xpose.msk.msrb.mxu3 %vm776_vm13, %v2102_v14  ;;  %vm759_vm12 = vcmp.eq.s32.totalorder %v2763_v42, %v2691_v33  ;;  %vm760_vm13 = vcmp.eq.s32.totalorder %v2765_v43, %v2691_v33 }
 0x124   : > { %1495 = vmatpush.xpose.msk.msrb.mxu0 %vm773_vm14, %v2102_v14  ;;  %1511 = vmatpush.xpose.msk.msrb.mxu1 %vm774_vm15, %v2102_v14  ;;  %vm757_vm14 = vcmp.eq.s32.totalorder %v2769_v44, %v2691_v33  ;;  %vm758_vm15 = vcmp.eq.s32.totalorder %v2771_v45, %v2691_v33 }
 0x127   : > { %1528 = vmatpush.xpose.msk.msrb.mxu2 %vm771_vm0, %v2102_v14  ;;  %1544 = vmatpush.xpose.msk.msrb.mxu3 %vm772_vm1, %v2102_v14  ;;  %vm755_vm0 = vcmp.eq.s32.totalorder %v2763_v42, %v2707_v35  ;;  %vm756_vm1 = vcmp.eq.s32.totalorder %v2765_v43, %v2707_v35 }
 0x128   : > { %1496 = vmatpush.xpose.msk.msrb.mxu0 %vm769_vm2, %v2102_v14  ;;  %1512 = vmatpush.xpose.msk.msrb.mxu1 %vm770_vm3, %v2102_v14  ;;  %vm753_vm2 = vcmp.eq.s32.totalorder %v2769_v44, %v2707_v35  ;;  %vm754_vm3 = vcmp.eq.s32.totalorder %v2771_v45, %v2707_v35 }
 0x12b   : > { %1529 = vmatpush.xpose.msk.msrb.mxu2 %vm767_vm4, %v2102_v14  ;;  %1545 = vmatpush.xpose.msk.msrb.mxu3 %vm768_vm5, %v2102_v14  ;;  %vm751_vm4 = vcmp.eq.s32.totalorder %v2763_v42, %v2723_v37  ;;  %vm752_vm5 = vcmp.eq.s32.totalorder %v2765_v43, %v2723_v37 }
 0x12c   : > { %1497 = vmatpush.xpose.msk.msrb.mxu0 %vm765_vm6, %v2102_v14  ;;  %1513 = vmatpush.xpose.msk.msrb.mxu1 %vm766_vm7, %v2102_v14  ;;  %vm749_vm6 = vcmp.eq.s32.totalorder %v2769_v44, %v2723_v37  ;;  %vm750_vm7 = vcmp.eq.s32.totalorder %v2771_v45, %v2723_v37 }
 0x12f   : > { %1530 = vmatpush.xpose.msk.msrb.mxu2 %vm763_vm8, %v2102_v14  ;;  %1546 = vmatpush.xpose.msk.msrb.mxu3 %vm764_vm9, %v2102_v14  ;;  %vm747_vm8 = vcmp.eq.s32.totalorder %v2763_v42, %v2739_v39  ;;  %vm748_vm9 = vcmp.eq.s32.totalorder %v2765_v43, %v2739_v39 }
 0x130   : > { %1498 = vmatpush.xpose.msk.msrb.mxu0 %vm761_vm10, %v2102_v14  ;;  %1514 = vmatpush.xpose.msk.msrb.mxu1 %vm762_vm11, %v2102_v14  ;;  %vm745_vm10 = vcmp.eq.s32.totalorder %v2769_v44, %v2739_v39  ;;  %vm746_vm11 = vcmp.eq.s32.totalorder %v2771_v45, %v2739_v39 }
 0x133   : > { %1531 = vmatpush.xpose.msk.msrb.mxu2 %vm759_vm12, %v2102_v14  ;;  %1547 = vmatpush.xpose.msk.msrb.mxu3 %vm760_vm13, %v2102_v14  ;;  %vm743_vm12 = vcmp.eq.s32.totalorder %v2763_v42, %v2757_v41  ;;  %vm744_vm13 = vcmp.eq.s32.totalorder %v2765_v43, %v2757_v41 }
 0x134   : > { %1499 = vmatpush.xpose.msk.msrb.mxu0 %vm757_vm14, %v2102_v14  ;;  %1515 = vmatpush.xpose.msk.msrb.mxu1 %vm758_vm15, %v2102_v14  ;;  %vm741_vm14 = vcmp.eq.s32.totalorder %v2769_v44, %v2757_v41  ;;  %vm742_vm15 = vcmp.eq.s32.totalorder %v2771_v45, %v2757_v41 }
 0x137   : > { %1532 = vmatpush.xpose.msk.msrb.mxu2 %vm755_vm0, %v2102_v14  ;;  %1548 = vmatpush.xpose.msk.msrb.mxu3 %vm756_vm1, %v2102_v14 }
 0x138   : > { %1500 = vmatpush.xpose.msk.msrb.mxu0 %vm753_vm2, %v2102_v14  ;;  %1516 = vmatpush.xpose.msk.msrb.mxu1 %vm754_vm3, %v2102_v14 }
 0x13b   : > { %1533 = vmatpush.xpose.msk.msrb.mxu2 %vm751_vm4, %v2102_v14  ;;  %1549 = vmatpush.xpose.msk.msrb.mxu3 %vm752_vm5, %v2102_v14 }
 0x13c   : > { %1501 = vmatpush.xpose.msk.msrb.mxu0 %vm749_vm6, %v2102_v14  ;;  %1517 = vmatpush.xpose.msk.msrb.mxu1 %vm750_vm7, %v2102_v14 }
 0x13f   : > { %1534 = vmatpush.xpose.msk.msrb.mxu2 %vm747_vm8, %v2102_v14  ;;  %1550 = vmatpush.xpose.msk.msrb.mxu3 %vm748_vm9, %v2102_v14 }
 0x140   : > { %1502 = vmatpush.xpose.msk.msrb.mxu0 %vm745_vm10, %v2102_v14  ;;  %1518 = vmatpush.xpose.msk.msrb.mxu1 %vm746_vm11, %v2102_v14 }
 0x143   : > { %1535 = vmatpush.xpose.msk.msrb.mxu2 %vm743_vm12, %v2102_v14  ;;  %1551 = vmatpush.xpose.msk.msrb.mxu3 %vm744_vm13, %v2102_v14 }
 0x144   : > { %1503 = vmatpush.xpose.msk.msrb.mxu0 %vm741_vm14, %v2102_v14  ;;  %1519 = vmatpush.xpose.msk.msrb.mxu1 %vm742_vm15, %v2102_v14  ;;  %v933_v14 = vld [vmem:[%s2503_s5] sm:$0xff] }
 0x146   : > { %997 = vmatmul.f32.vlgmr.msrb.gmra.mxu2 %v2834_v46  ;;  %1020 = vmatmul.f32.vlgmr.msrb.gmra.mxu3 %v2850_v47 }
 0x147   : > { %951 = vmatmul.f32.vlgmr.msrb.gmra.mxu0 %v2853_v48  ;;  %974 = vmatmul.f32.vlgmr.msrb.gmra.mxu1 %v2856_v49 }
 0x14e   : > { %1000 = vmatmul.f32.gmra.mxu2 %v2874_v50  ;;  %1023 = vmatmul.f32.gmra.mxu3 %v2890_v51 }
 0x14f   : > { %954 = vmatmul.f32.gmra.mxu0 %v2893_v52  ;;  %977 = vmatmul.f32.gmra.mxu1 %v2896_v53 }
 0x186   : > { %v657_v54 = vpop.f32.mrf.mxu0  ;;  %v680_v55 = vpop.f32.mrf.mxu1 }
 0x187   : > { %v681_v57 = vadd.f32 %v680_v55, %v657_v54 }
 0x189   : > { %v703_v56 = vpop.f32.mrf.mxu2  ;;  %v726_v60 = vpop.f32.mrf.mxu3 }
 0x18a   : > { %v704_v58 = vadd.f32 %v703_v56, %v681_v57 }
 0x18c   : > { %v727_v61 = vadd.f32 %v726_v60, %v704_v58 }
 0x18e   : > { %v660_v62 = vpop.f32.mrf.mxu0  ;;  %v732_v63 = vadd.f32 %v727_v61, %v638_v59  ;;  %v683_v0 = vpop.f32.mrf.mxu1 }
 0x18f   : > { %v684_v2 = vadd.f32 %v683_v0, %v660_v62 }
 0x190   : > { %734 = vst [vmem:[%s2499_s4] sm:$0xff] %v732_v63 }
 0x191   : > { %v706_v1 = vpop.f32.mrf.mxu2  ;;  %v729_v5 = vpop.f32.mrf.mxu3 }
 0x192   : > { %v707_v3 = vadd.f32 %v706_v1, %v684_v2 }
 0x194   : > { %v730_v6 = vadd.f32 %v729_v5, %v707_v3 }
 0x196   : > { %v733_v7 = vadd.f32 %v730_v6, %v639_v4 }
 0x198   : > { %735 = vst [vmem:[%s2499_s4 + $0x8] sm:$0xff] %v733_v7 }
 0x1c4   : > { %v952_v8 = vpop.f32.mrf.mxu0  ;;  %v975_v9 = vpop.f32.mrf.mxu1 }
 0x1c5   : > { %v976_v10 = vadd.f32 %v975_v9, %v952_v8 }
 0x1c9   : > { %v998_v11 = vpop.f32.mrf.mxu2  ;;  %v1021_v12 = vpop.f32.mrf.mxu3 }
 0x1ca   : > { %v999_v13 = vadd.f32 %v998_v11, %v976_v10 }
 0x1cc   : > { %v1022_v15 = vadd.f32 %v1021_v12, %v999_v13  ;;  %v955_v16 = vpop.f32.mrf.mxu0  ;;  %v978_v17 = vpop.f32.mrf.mxu1 }
 0x1cd   : > { %v979_v19 = vadd.f32 %v978_v17, %v955_v16 }
 0x1ce   : > { %v1027_v18 = vadd.f32 %v1022_v15, %v933_v14 }
 0x1d0   : > { %1029 = vst [vmem:[%s2503_s5] sm:$0xff] %v1027_v18 }
 0x1d1   : > { %v1001_v20 = vpop.f32.mrf.mxu2  ;;  %v1024_v21 = vpop.f32.mrf.mxu3 }
 0x1d2   : > { %v1002_v22 = vadd.f32 %v1001_v20, %v979_v19 }
 0x1d4   : > { %v1025_v24 = vadd.f32 %v1024_v21, %v1002_v22 }
 0x1d6   : > { %v1028_v25 = vadd.f32 %v1025_v24, %v934_v23 }
 0x1d8   : > { %1030 = vst [vmem:[%s2503_s5 + $0x8] sm:$0xff] %v1028_v25 }
 0x1d9 PF: > { %s3261_s25 = sld [smem:[#allocation33_spill]]  ;;  %v1034_v26 = vld [vmem:[%s2499_s4 + $0xc] sm:$0x1]  ;;  %s1099_s27 = sshll.u32 %s2499_s4, 4  ;;  %v1038_v49 = vld [vmem:[%s2499_s4] sm:$0xff]  ;;  %s3068_s27 = int_to_ptr.vmem [resolvable:$true] %s1099_s27 }
 0x1da   : > { %s3262_s2 = sld [smem:[#allocation36_spill]]  ;;  %v1035_v27 = vmax.f32 %v1034_v26, 1.0  ;;  %v1039_v50 = vld [vmem:[%s2499_s4 + $0x8] sm:$0xff]  ;;  %v1059_v53 = vld [vmem:[%s2503_s5] sm:$0xff] }
 0x1db   : > { %s3263_s14 = sld [smem:[#allocation39_spill]] }
 0x1dc   : > { %v1040_v30 = vperm.slane %v1035_v27, 0  ;;  %s3270_s12 = sld [smem:[#allocation47_spill]] }
 0x1de   : > { %1757 = vrcp.f32 %v1040_v30  ;;  %vm1046_vm0 = vweird.f32 %v1040_v30  ;;  %v1052_v35 = vand.u32 2147483648, %v1040_v30  ;;  %v1050_v38 = vand.u32 2147483647, %v1040_v30 }
 0x1df   : > { %v1036_v28 = vld [vmem:[%s2503_s5 + $0xc] sm:$0x1] }
 0x1e0   : > { %v1037_v29 = vmax.f32 %v1036_v28, 1.0  ;;  %p3264_p7 = scmp.ne.s32.totalorder %s3262_s2, 0  ;;  %v1053_v44 = vor.u32 1.1754944e-38, %v1052_v35  ;;  %vm1051_vm5 = vcmp.eq.f32.partialorder %v1050_v38, 8.507059e+37  ;;  %v1060_v54 = vld [vmem:[%s2503_s5 + $0x8] sm:$0xff] }
 0x1e1   : > { %p3265_p13 = scmp.ne.s32.totalorder %s3263_s14, 0 }
 0x1e2   : > { %s1572_s0 = scalar_select %p3264_p7, %s3261_s25, 0  ;;  %v1061_v31 = vperm.slane %v1037_v29, 0 }
 0x1e3   : > { %s1571_s26 = scalar_select %p3264_p7, [#allocation3], [#allocation17] }
 0x1e4   : > { %1759 = vrcp.f32 %v1061_v31  ;;  %s1574_s24 = scalar_select %p3265_p13, [#allocation3], [#allocation18]  ;;  %v1758_v32 = vpop.eup %1757  ;;  %v1073_v39 = vand.u32 2147483648, %v1061_v31  ;;  %vm1067_vm2 = vweird.f32 %v1061_v31  ;;  %v1071_v41 = vand.u32 2147483647, %v1061_v31 }
 0x1e5   : > { %s3321_s25 = smov (!%p3265_p13, %s3261_s25), 0  ;;  %s3039_s28 = sld [smem:[%s1571_s26 + %s1572_s0]]  ;;  %v1042_v34 = vmul.f32 %v1758_v32, %v1040_v30  ;;  %vm1047_vm1 = vweird.f32 %v1758_v32 }
 0x1e6   : > { %s3041_s23 = sld [smem:[%s1574_s24 + %s3321_s25]]  ;;  %vm3044_vm4 = vmor %vm1046_vm0, %vm1047_vm1  ;;  %v1074_v48 = vor.u32 1.1754944e-38, %v1073_v39  ;;  %vm1072_vm7 = vcmp.eq.f32.partialorder %v1071_v41, 8.507059e+37  ;;  %s3271_s25 = smov %s3270_s12 }
 0x1e7   : > { %v1043_v37 = vsub.f32 1.0, %v1042_v34  ;;  %s3272_s26 = sld [smem:[#allocation48_spill]] }
 0x1e9   : > { %v1044_v42 = vmul.f32 %v1758_v32, %v1043_v37 }
 0x1ea   : > { %v1760_v33 = vpop.eup %1759 }
 0x1eb   : > { %v1063_v36 = vmul.f32 %v1760_v33, %v1061_v31  ;;  %vm1068_vm3 = vweird.f32 %v1760_v33  ;;  %s1554_s22 = sshll.u32 %s3039_s28, 3  ;;  %v1045_v46 = vadd.f32 %v1758_v32, %v1044_v42 }
 0x1ec   : > { %s1555_s6 = sshll.u32 %s3041_s23, 3  ;;  %vm3049_vm6 = vmor %vm1067_vm2, %vm1068_vm3  ;;  %s1098_s29 = scalar_lea.hbm %s3270_s12, %s1554_s22 }
 0x1ed   : > { %v1064_v40 = vsub.f32 1.0, %v1063_v36  ;;  %v1049_v52 = vsel %vm3044_vm4, %v1758_v32, %v1045_v46  ;;  %s1116_s24 = scalar_lea.hbm %s3272_s26, %s1555_s6  ;;  %s1101_s28 = sshll.u32 %s1098_s29, 4  ;;  %s1102_s28 = int_to_ptr.hbm [resolvable:$true] %s1101_s28 }
 0x1ee   : > { %v1054_v55 = vsel %vm1051_vm5, %v1053_v44, %v1049_v52  ;;  %s1117_s23 = sshll.u32 %s2503_s5, 4  ;;  %s1119_s22 = sshll.u32 %s1116_s24, 4  ;;  %s3074_s23 = int_to_ptr.vmem [resolvable:$true] %s1117_s23  ;;  %s3076_s22 = int_to_ptr.hbm [resolvable:$true] %s1119_s22 }
 0x1ef   : > { %v1065_v45 = vmul.f32 %v1760_v33, %v1064_v40  ;;  %v1055_v57 = vmul.f32 %v1054_v55, %v1038_v49  ;;  %v1056_v58 = vmul.f32 %v1054_v55, %v1039_v50  ;;  %s1081_s6 = scalar_lea.sflag [#allocation7], %s347_s30  ;;  %s1889_s21 = sshra.s32 %s1102_s28, 4  ;;  %s1890_s21 = int_to_ptr.hbm [resolvable:$true] %s1889_s21 }
 0x1f0   : > { %s1891_s18 = scalar_lea.hbm %s1890_s21, 16  ;;  %p1896_p4 = scmp.lt.s32.totalorder %s1890_s21, %s3271_s25 }
 0x1f1   : > { %v1066_v51 = vadd.f32 %v1760_v33, %v1065_v45  ;;  %1057 = vst [vmem:[%s2499_s4] sm:$0xff] %v1055_v57  ;;  %p1892_p9 = scmp.ne.s32.totalorder %s1890_s21, %s1891_s18 }
 0x1f2   : > { %1058 = vst [vmem:[%s2499_s4 + $0x8] sm:$0xff] %v1056_v58  ;;  %s1895_s4 = scalar_lea.hbm %s3271_s25, 64 }
 0x1f3   : > { %v1070_v56 = vsel %vm3049_vm6, %v1760_v33, %v1066_v51  ;;  %p1893_p2 = pnand %p1892_p9, %p3264_p7  ;;  %p1897_p1 = scmp.lt.s32.totalorder %s1895_s4, %s1891_s18 }
 0x1f4   : > { %v1075_v59 = vsel %vm1072_vm7, %v1074_v48, %v1070_v56 }
 0x1f5   : > { %v1076_v60 = vmul.f32 %v1075_v59, %v1059_v53  ;;  %v1077_v61 = vmul.f32 %v1075_v59, %v1060_v54  ;;  %p1894_p0 = pneg %p1893_p2  ;;  %p1898_p8 = por %p1897_p1, %p1896_p4 }
 0x1f7   : > { %1078 = vst [vmem:[%s2503_s5] sm:$0xff] %v1076_v60  ;;  %p1899_p12 = pnand %p1898_p8, %p1894_p0 }
 0x1f8   : > { %1079 = vst [vmem:[%s2503_s5 + $0x8] sm:$0xff] %v1077_v61 }
 0x1f9   : > { %1902 = shalt.err (!%p1899_p12)
}
 0x1fa   : > { %s2103_s30 = smov 128   ;;  %s2104_s5 = smov 512  }
 0x1fb   : > { %s2105_s24 = smov 8   ;;  %s1086_s12 = scalar_lea.sflag [#allocation13], %s354_s15 }
 0x1fc   : > { %1573 = dma.vmem_to_hbm [thread:$0]  (%p3264_p7), %s3068_s27, 256, %s1102_s28, %s1081_s6, %s2103_s30, %s2104_s5, %s2105_s24  }
 0x1fd   : > { %s1917_s29 = sshra.s32 %s3076_s22, 4  ;;  %s1923_s4 = scalar_lea.hbm %s3272_s26, 64  ;;  %s1918_s29 = int_to_ptr.hbm [resolvable:$true] %s1917_s29 }
 0x1fe   : > { %s1919_s9 = scalar_lea.hbm %s1918_s29, 16  ;;  %p1924_p3 = scmp.lt.s32.totalorder %s1918_s29, %s3272_s26 }
 0x1ff   : > { %p1920_p6 = scmp.ne.s32.totalorder %s1918_s29, %s1919_s9  ;;  %p1925_p5 = scmp.lt.s32.totalorder %s1923_s4, %s1919_s9 }
 0x201   : > { %p1921_p11 = pnand %p1920_p6, %p3265_p13  ;;  %p1926_p9 = por %p1925_p5, %p1924_p3 }
 0x203   : > { %p1922_p10 = pneg %p1921_p11 }
 0x205   : > { %p1927_p7 = pnand %p1926_p9, %p1922_p10 }
 0x207   : > { %1930 = shalt.err (!%p1927_p7)
}
 0x208   : > { %1576 = dma.vmem_to_hbm [thread:$0]  (%p3265_p13), %s3074_s23, 256, %s3076_s22, %s1086_s12, %s2103_s30, %s2104_s5, %s2105_s24  }
 0x209 PF: > { %s3273_s15 = sld [smem:[#allocation30_spill]]  ;;  %p3276_p0 = scmp.ge.s32.totalorder %s2095_s20, 2 }
 0x20a   : > { %s3274_s2 = sld [smem:[#allocation37_spill]] }
 0x20f   : > { %s1134_s27 = sand.u32 1, %s3273_s15  }
 0x210   : > { %p3275_p2 = scmp.ne.s32.totalorder %s3274_s2, 0  ;;  %s1135_s3 = scalar_lea.sflag [#allocation7], %s1134_s27 }
 0x212   : > { %p1596_p4 = pnand %p3276_p0, %p3275_p2 }
 0x214   : > { %p1597_p1 = pneg %p1596_p4 }
 0x216   : > { %2018 = dma.done.wait (%p1597_p1), %s1135_s3, 256  }
 0x217   : > { %2020 = vsyncadd (%p1597_p1), %s1135_s3, 4294967040  ;;  %s3277_s28 = sld [smem:[#allocation28_spill]]  ;;  %p3280_p12 = pmov %p3276_p0 }
 0x218   : > { %s3278_s6 = sld [smem:[#allocation41_spill]] }
 0x21d   : > { %s1144_s29 = sand.u32 1, %s3277_s28  }
 0x21e   : > { %p3279_p8 = scmp.ne.s32.totalorder %s3278_s6, 0  ;;  %s1145_s14 = scalar_lea.sflag [#allocation13], %s1144_s29 }
 0x220   : > { %p1599_p6 = pnand %p3280_p12, %p3279_p8 }
 0x222   : > { %p1600_p13 = pneg %p1599_p6 }
 0x224   : > { %2022 = dma.done.wait (%p1600_p13), %s1145_s14, 256  }
 0x225   : > { %2024 = vsyncadd (%p1600_p13), %s1145_s14, 4294967040  ;;  %s42_s20 = sadd.s32 1, %s2095_s20   ;;  %s3282_s22 = sld [smem:[#allocation29_spill]] }
 0x226   : > { %p3118_p11 = scmp.ge.s32.totalorder %s42_s20, 4   ;;  %s3283_s29 = sld [smem:[#allocation42_spill]] }
 0x227   : > { %s3284_s5 = sld [smem:[#allocation31_spill]]  ;;  %s3286_s12 = smov %s2435_s8 }
 0x228   : > { %s3285_s24 = sld [smem:[#allocation40_spill]]  ;;  %s3290_s0 = smov %s2031_s1 }
 0x229   : > { %s3287_s21 = sld [smem:[#allocation32_spill]]  ;;  %s3293_s30 = smov %s2043_s7 }
 0x22a   : > { %s3288_s14 = sld [smem:[#allocation38_spill]]  ;;  %s3296_s9 = smov %s2055_s10 }
 0x22b   : > { %s3289_s18 = sld [smem:[#allocation43_spill]]  ;;  %s3292_s1 = smov %s3282_s22 }
 0x22c   : > { %s3291_s4 = sld [smem:[#allocation34_spill]]  ;;  %s3297_s10 = smov %s2059_s11 }
 0x22d   : > { %s3294_s7 = smov %s3284_s5  ;;  %s3298_s11 = smov %s3286_s12 }
 0x22e   : > { %s3295_s8 = smov %s3285_s24  ;;  %s3299_s12 = smov %s2067_s13 }
 0x22f   : > { %s3300_s13 = smov %s3287_s21  ;;  %s3301_s15 = smov %s2079_s16 }
 0x230   : > { %s3302_s16 = smov %s2083_s17  ;;  %41 = sbr.rel (!%p3118_p11) target bundleno = 27 (0x1b), region = 130 }
 0x231   : > { %s3303_s17 = smov %s3289_s18  ;;  %s3304_s18 = smov %s2091_s19 }
 0x232   : > { %s3305_s19 = smov %s3291_s4 }
 0x235   :  { %1151 = vsyncpa [#allocation6], 1 }
 0x236   :  { %1153 = vsyncpa [#allocation6 + $0x1], 1 }
 0x237   :  { %1154 = vsyncpa [#allocation9], 1 }
 0x238   :  { %1156 = vsyncpa [#allocation9 + $0x1], 1 }
 0x239   :  { %1157 = vsyncpa [#allocation7], 1 }
 0x23a   :  { %1159 = vsyncpa [#allocation7 + $0x1], 1 }
 0x23b   :  { %1160 = vsyncpa [#allocation13], 1 }
 0x23c   :  { %1162 = vsyncpa [#allocation13 + $0x1], 1 }

</bundles_post_ra>
